<compile_context>
chip_gen: v6e
topology: v6e:2x2x1
jax: 0.10.0
libtpu: 0.0.40
codegen_flags: <defaults>
</compile_context>

<pallas_src>
import functools

import jax
import jax.numpy as jnp
from jax.experimental import pallas as pl
from jax.experimental.pallas import tpu as pltpu

SPLIT = 2500  # hard-coded split point from the PyTorch module


def _ecg_clocks_kernel(x_ref, w_enc_ref, b_enc_ref, w1a_ref, w1b_ref, b1_ref,
                       w2_ref, b2_ref, out_ref, acc1_ref, acc2_ref,
                       *, split, total_t, block_t, block_b):
    t = pl.program_id(1)
    n_t = pl.num_programs(1)
    block_start = t * block_t
    block_end = block_start + block_t

    # ----- zero the per-half time-sum accumulators at the start of each
    #       batch block's reduction over T -----
    @pl.when(t == 0)
    def _zero():
        acc1_ref[...] = jnp.zeros_like(acc1_ref)
        acc2_ref[...] = jnp.zeros_like(acc2_ref)

    # Scalar-gated routing: blocks entirely inside one half (and inside T) take
    # the cheap unmasked-sum path; only the straddling block and the ragged
    # last block pay the iota/mask cost.
    in_first = block_end <= split
    in_second = jnp.logical_and(block_start >= split, block_end <= total_t)
    needs_mask = jnp.logical_not(jnp.logical_or(in_first, in_second))

    @pl.when(in_first)
    def _fast_first():
        acc1_ref[...] += jnp.sum(x_ref[...].astype(jnp.float32), axis=-1)

    @pl.when(in_second)
    def _fast_second():
        acc2_ref[...] += jnp.sum(x_ref[...].astype(jnp.float32), axis=-1)

    @pl.when(needs_mask)
    def _masked():
        xb = x_ref[...].astype(jnp.float32)                     # (Bt, C, Tt)
        gt = jax.lax.broadcasted_iota(jnp.int32, xb.shape, 2) + block_start
        first = gt < split
        valid = gt < total_t                                     # drop ragged tail
        second = jnp.logical_and(valid, jnp.logical_not(first))
        acc1_ref[...] += jnp.sum(jnp.where(first, xb, 0.0), axis=-1)
        acc2_ref[...] += jnp.sum(jnp.where(second, xb, 0.0), axis=-1)

    # ----- encoder + classifier, once per batch block -----
    @pl.when(t == n_t - 1)
    def _epilogue():
        p1 = acc1_ref[...] * (1.0 / split)                 # true half lengths,
        p2 = acc2_ref[...] * (1.0 / (total_t - split))     # not block counts
        p = jnp.concatenate([p1, p2], axis=0)              # (2*Bt, C)
        e = jnp.tanh(jnp.dot(p, w_enc_ref[...],
                             preferred_element_type=jnp.float32) + b_enc_ref[...])
        e1 = e[:block_b]
        e2 = e[block_b:]
        # agg_func='cat' fused into Linear(2E -> E):
        #   cat([e1, e2], -1) @ W1 == e1 @ W1[:E] + e2 @ W1[E:]
        h = (jnp.dot(e1, w1a_ref[...], preferred_element_type=jnp.float32)
             + jnp.dot(e2, w1b_ref[...], preferred_element_type=jnp.float32)
             + b1_ref[...])
        h = jnp.maximum(h, 0.0)          # ReLU; Dropout(0.1) -> identity (eval)
        logits = jnp.dot(h, w2_ref[...],
                         preferred_element_type=jnp.float32) + b2_ref[...]
        out_ref[...] = jax.nn.sigmoid(logits).astype(out_ref.dtype)


def _choose_tiles(B, C, T, dtype, block_b=None, block_t=None,
                  x_vmem_budget_bytes=12 * 1024 * 1024):
    """Pick (block_b, block_t) and the double-buffered x VMEM footprint."""
    itemsize = jnp.dtype(dtype).itemsize
    spc = 8 * max(1, 4 // itemsize)            # sublane packing: 8 f32, 16 bf16
    padded_c = -(-C // spc) * spc              # C pads up to a full sublane tile

    if block_b is None:
        block_b = 64
    block_b = max(1, min(block_b, B))
    if block_b >= 8:
        block_b = (block_b // 8) * 8
    # keep >= 2 batch blocks when B allows, so the "parallel" batch axis can
    # actually split across v7x's two TensorCores
    if block_b >= B and B > 8:
        block_b = max(8, ((B // 2) // 8) * 8)

    def x_buf_bytes(bt):                       # double-buffered x tile
        return 2 * block_b * padded_c * bt * itemsize

    if block_t is None:
        if x_buf_bytes(T) <= x_vmem_budget_bytes:
            block_t = T                        # collapse the T grid entirely
        else:
            bt = x_vmem_budget_bytes // (2 * block_b * padded_c * itemsize)
            block_t = max(512, (bt // 128) * 128)
    block_t = min(block_t, T)
    return block_b, block_t, x_buf_bytes(block_t)


def ecg_clocks_forward(x, params, *, split=SPLIT, block_b=None, block_t=None):
    """x: (B, C, T) float32/bfloat16.  Returns (B, num_classes) probabilities.

    block_b: batch tile (multiple of 8, or full B).  Auto-chosen if None.
    block_t: time tile (multiple of 128, or full T).  Auto-chosen if None
             (defaults to the full T so the reduction is a single big DMA).
    """
    B, C, T = x.shape
    assert T > split, "ECG_CLOCKS_Classifier hard-codes a split at t=2500 (needs T > 2500)"
    E = params["w_enc"].shape[1]
    NC = params["w2"].shape[1]

    block_b, block_t, x_buf_bytes = _choose_tiles(B, C, T, x.dtype, block_b, block_t)

    kernel = functools.partial(_ecg_clocks_kernel, split=split, total_t=T,
                               block_t=block_t, block_b=block_b)

    grid_spec = pltpu.PrefetchScalarGridSpec(
        num_scalar_prefetch=0,
        grid=(pl.cdiv(B, block_b), pl.cdiv(T, block_t)),
        in_specs=[
            # x: tiled over batch and time; C (=full extent) stays whole.
            pl.BlockSpec((block_b, C, block_t), lambda b, t: (b, 0, t)),
            # small weights: resident (same block every iteration -> no re-DMA)
            pl.BlockSpec((C, E), lambda b, t: (0, 0)),
            pl.BlockSpec((1, E), lambda b, t: (0, 0)),
            pl.BlockSpec((E, E), lambda b, t: (0, 0)),
            pl.BlockSpec((E, E), lambda b, t: (0, 0)),
            pl.BlockSpec((1, E), lambda b, t: (0, 0)),
            pl.BlockSpec((E, NC), lambda b, t: (0, 0)),
            pl.BlockSpec((1, NC), lambda b, t: (0, 0)),
        ],
        out_specs=pl.BlockSpec((block_b, NC), lambda b, t: (b, 0)),
        scratch_shapes=[pltpu.VMEM((block_b, C), jnp.float32),
                        pltpu.VMEM((block_b, C), jnp.float32)],
    )

    # Tiles are sized against a ~12 MiB x budget; raise the scoped-VMEM limit
    # with headroom (safe on v5e 128 MiB / v6e 128 MiB / v7x 64 MiB physical).
    vmem_limit = int(min(max(32 * 1024 * 1024, 2 * x_buf_bytes + 8 * 1024 * 1024),
                         48 * 1024 * 1024))

    return pl.pallas_call(
        kernel,
        out_shape=jax.ShapeDtypeStruct((B, NC), jnp.float32),
        grid_spec=grid_spec,
        compiler_params=pltpu.CompilerParams(
            # batch axis shards across v7x's 2 TensorCores; T axis is a reduction
            dimension_semantics=("parallel", "arbitrary"),
            vmem_limit_bytes=vmem_limit),
    )(x, params["w_enc"], params["b_enc"], params["w1a"], params["w1b"],
      params["b1"], params["w2"], params["b2"])


def init_params(key, in_channels, embedded_size, num_classes):
    ks = jax.random.split(key, 6)
    s = 0.1
    return {
        # synthetic encoder: Linear(C -> E)
        "w_enc": s * jax.random.normal(ks[0], (in_channels, embedded_size), jnp.float32),
        "b_enc": s * jax.random.normal(ks[1], (1, embedded_size), jnp.float32),
        # classifier Linear(2E -> E), split into the two E-sized halves (for 'cat')
        "w1a": s * jax.random.normal(ks[2], (embedded_size, embedded_size), jnp.float32),
        "w1b": s * jax.random.normal(ks[3], (embedded_size, embedded_size), jnp.float32),
        "b1":  s * jax.random.normal(ks[4], (1, embedded_size), jnp.float32),
        # classifier Linear(E -> num_classes)
        "w2":  s * jax.random.normal(ks[5], (embedded_size, num_classes), jnp.float32),
        "b2":  jnp.zeros((1, num_classes), jnp.float32),
    }


def reference_forward(x, params, split=SPLIT):
    """Pure-JAX reference mirroring the PyTorch forward (agg_func='cat', eval)."""
    def enc(xi):
        p = jnp.mean(xi.astype(jnp.float32), axis=-1)
        return jnp.tanh(p @ params["w_enc"] + params["b_enc"])
    e1, e2 = enc(x[:, :, :split]), enc(x[:, :, split:])
    cat = jnp.concatenate([e1, e2], axis=-1)
    w1 = jnp.concatenate([params["w1a"], params["w1b"]], axis=0)
    h = jnp.maximum(cat @ w1 + params["b1"], 0.0)
    return jax.nn.sigmoid(h @ params["w2"] + params["b2"])


if __name__ == "__main__":
    # T must exceed 2500 because the module hard-codes the split point.
    B, C, T = 8, 4, 5000
    E, NUM_CLASSES = 256, 1

    key = jax.random.PRNGKey(0)
    kx, kp = jax.random.split(key)
    x = jax.random.normal(kx, (B, C, T), jnp.float32)
    params = init_params(kp, C, E, NUM_CLASSES)
    ref = reference_forward(x, params)

    # 1) default tiles: T grid collapsed (block_t == T) -> one DMA per batch block
    out = jax.block_until_ready(ecg_clocks_forward(x, params))
    assert out.shape == (B, NUM_CLASSES)
    assert jnp.allclose(out, ref, atol=5e-5, rtol=1e-4), (out, ref)

    # 2) ragged tiling: B not a multiple of block_b, T not a multiple of block_t,
    #    plus a block straddling the split at t=2500 (exercises the mask path).
    x2 = jax.random.normal(jax.random.PRNGKey(1), (12, C, T), jnp.float32)
    ref2 = reference_forward(x2, params)
    out2 = jax.block_until_ready(ecg_clocks_forward(x2, params, block_b=8, block_t=512))
    assert out2.shape == (12, NUM_CLASSES)
    assert jnp.allclose(out2, ref2, atol=5e-5, rtol=1e-4), (out2, ref2)

    # 3) bf16 input (halves the dominant HBM read); accumulation stays f32.
    xbf = x.astype(jnp.bfloat16)
    refbf = reference_forward(xbf, params)
    outbf = jax.block_until_ready(ecg_clocks_forward(xbf, params))
    assert jnp.allclose(outbf, refbf, atol=1e-3, rtol=1e-3), (outbf, refbf)

    print("KERNEL_OK")
</pallas_src>

<mosaic_0001>
module attributes {stable_mosaic.version = 11 : i64} {
  func.func @_ecg_clocks_kernel(%arg0: i32, %arg1: i32, %arg2: memref<8x4x5000xf32, #tpu.memory_space<vmem>>, %arg3: memref<4x256xf32, #tpu.memory_space<vmem>>, %arg4: memref<1x256xf32, #tpu.memory_space<vmem>>, %arg5: memref<256x256xf32, #tpu.memory_space<vmem>>, %arg6: memref<256x256xf32, #tpu.memory_space<vmem>>, %arg7: memref<1x256xf32, #tpu.memory_space<vmem>>, %arg8: memref<256x1xf32, #tpu.memory_space<vmem>>, %arg9: memref<1x1xf32, #tpu.memory_space<vmem>>, %arg10: memref<8x1xf32, #tpu.memory_space<vmem>>, %arg11: memref<8x4xf32, #tpu.memory_space<vmem>>, %arg12: memref<8x4xf32, #tpu.memory_space<vmem>>) attributes {dimension_semantics = [#tpu.dimension_semantics<parallel>, #tpu.dimension_semantics<arbitrary>], iteration_bounds = array<i64: 1, 1>, scalar_prefetch = 0 : i64, scratch_operands = 2 : i64, tpu.core_type = #tpu.core_type<tc>, window_params = [{transform_indices = @transform_0, window_bounds = array<i64: 8, 4, 5000>}, {pipeline_mode = #tpu.pipeline_mode<synchronous>, transform_indices = @transform_1, window_bounds = array<i64: 4, 256>}, {pipeline_mode = #tpu.pipeline_mode<synchronous>, transform_indices = @transform_2, window_bounds = array<i64: 1, 256>}, {pipeline_mode = #tpu.pipeline_mode<synchronous>, transform_indices = @transform_3, window_bounds = array<i64: 256, 256>}, {pipeline_mode = #tpu.pipeline_mode<synchronous>, transform_indices = @transform_4, window_bounds = array<i64: 256, 256>}, {pipeline_mode = #tpu.pipeline_mode<synchronous>, transform_indices = @transform_5, window_bounds = array<i64: 1, 256>}, {pipeline_mode = #tpu.pipeline_mode<synchronous>, transform_indices = @transform_6, window_bounds = array<i64: 256, 1>}, {pipeline_mode = #tpu.pipeline_mode<synchronous>, transform_indices = @transform_7, window_bounds = array<i64: 1, 1>}, {transform_indices = @transform_8, window_bounds = array<i64: 8, 1>}]} {
    %c5000_i32 = arith.constant 5000 : i32
    %0 = arith.muli %arg1, %c5000_i32 : i32
    %c5000_i32_0 = arith.constant 5000 : i32
    %1 = arith.addi %0, %c5000_i32_0 : i32
    %c0_i32 = arith.constant 0 : i32
    %2 = arith.cmpi eq, %arg1, %c0_i32 : i32
    %3 = arith.extui %2 : i1 to i32
    %c0_i32_1 = arith.constant 0 : i32
    %4 = arith.cmpi ne, %3, %c0_i32_1 : i32
    scf.if %4 {
      %cst = arith.constant 0.000000e+00 : f32
      %20 = vector.broadcast %cst : f32 to vector<8x4xf32>
      %c0 = arith.constant 0 : index
      %c0_9 = arith.constant 0 : index
      %21 = vector.load %arg11[%c0, %c0_9] : memref<8x4xf32, #tpu.memory_space<vmem>>, vector<8x4xf32>
      tpu.vector_store %arg11[%c0, %c0_9], %20 {strides = array<i32>} : memref<8x4xf32, #tpu.memory_space<vmem>>, vector<8x4xf32>,
      %cst_10 = arith.constant 0.000000e+00 : f32
      %22 = vector.broadcast %cst_10 : f32 to vector<8x4xf32>
      %c0_11 = arith.constant 0 : index
      %c0_12 = arith.constant 0 : index
      %23 = vector.load %arg12[%c0_11, %c0_12] : memref<8x4xf32, #tpu.memory_space<vmem>>, vector<8x4xf32>
      tpu.vector_store %arg12[%c0_11, %c0_12], %22 {strides = array<i32>} : memref<8x4xf32, #tpu.memory_space<vmem>>, vector<8x4xf32>,
    } else {
    }
    %c2500_i32 = arith.constant 2500 : i32
    %5 = arith.cmpi sle, %1, %c2500_i32 : i32
    %c2500_i32_2 = arith.constant 2500 : i32
    %6 = arith.cmpi sge, %0, %c2500_i32_2 : i32
    %c5000_i32_3 = arith.constant 5000 : i32
    %7 = arith.cmpi sle, %1, %c5000_i32_3 : i32
    %8 = arith.andi %6, %7 : i1
    %9 = arith.ori %5, %8 : i1
    %true = arith.constant true
    %10 = arith.xori %9, %true : i1
    %11 = arith.extui %5 : i1 to i32
    %c0_i32_4 = arith.constant 0 : i32
    %12 = arith.cmpi ne, %11, %c0_i32_4 : i32
    scf.if %12 {
      %c0 = arith.constant 0 : index
      %c0_9 = arith.constant 0 : index
      %20 = vector.load %arg11[%c0, %c0_9] : memref<8x4xf32, #tpu.memory_space<vmem>>, vector<8x4xf32>
      %c0_10 = arith.constant 0 : index
      %c0_11 = arith.constant 0 : index
      %c0_12 = arith.constant 0 : index
      %21 = vector.load %arg2[%c0_10, %c0_11, %c0_12] : memref<8x4x5000xf32, #tpu.memory_space<vmem>>, vector<8x4x5000xf32>
      %cst = arith.constant dense<0.000000e+00> : vector<8x4xf32>
      %22 = vector.multi_reduction <add>, %21, %cst [2] : vector<8x4x5000xf32> to vector<8x4xf32>
      %23 = arith.addf %20, %22 : vector<8x4xf32>
      %c0_13 = arith.constant 0 : index
      %c0_14 = arith.constant 0 : index
      %24 = vector.load %arg11[%c0_13, %c0_14] : memref<8x4xf32, #tpu.memory_space<vmem>>, vector<8x4xf32>
      tpu.vector_store %arg11[%c0_13, %c0_14], %23 {strides = array<i32>} : memref<8x4xf32, #tpu.memory_space<vmem>>, vector<8x4xf32>,
    } else {
    }
    %13 = arith.extui %8 : i1 to i32
    %c0_i32_5 = arith.constant 0 : i32
    %14 = arith.cmpi ne, %13, %c0_i32_5 : i32
    scf.if %14 {
      %c0 = arith.constant 0 : index
      %c0_9 = arith.constant 0 : index
      %20 = vector.load %arg12[%c0, %c0_9] : memref<8x4xf32, #tpu.memory_space<vmem>>, vector<8x4xf32>
      %c0_10 = arith.constant 0 : index
      %c0_11 = arith.constant 0 : index
      %c0_12 = arith.constant 0 : index
      %21 = vector.load %arg2[%c0_10, %c0_11, %c0_12] : memref<8x4x5000xf32, #tpu.memory_space<vmem>>, vector<8x4x5000xf32>
      %cst = arith.constant dense<0.000000e+00> : vector<8x4xf32>
      %22 = vector.multi_reduction <add>, %21, %cst [2] : vector<8x4x5000xf32> to vector<8x4xf32>
      %23 = arith.addf %20, %22 : vector<8x4xf32>
      %c0_13 = arith.constant 0 : index
      %c0_14 = arith.constant 0 : index
      %24 = vector.load %arg12[%c0_13, %c0_14] : memref<8x4xf32, #tpu.memory_space<vmem>>, vector<8x4xf32>
      tpu.vector_store %arg12[%c0_13, %c0_14], %23 {strides = array<i32>} : memref<8x4xf32, #tpu.memory_space<vmem>>, vector<8x4xf32>,
    } else {
    }
    %15 = arith.extui %10 : i1 to i32
    %c0_i32_6 = arith.constant 0 : i32
    %16 = arith.cmpi ne, %15, %c0_i32_6 : i32
    scf.if %16 {
      %c0 = arith.constant 0 : index
      %c0_9 = arith.constant 0 : index
      %c0_10 = arith.constant 0 : index
      %20 = vector.load %arg2[%c0, %c0_9, %c0_10] : memref<8x4x5000xf32, #tpu.memory_space<vmem>>, vector<8x4x5000xf32>
      %21 = tpu.iota {dimensions = array<i32: 2>} : vector<8x4x5000xi32>
      %22 = vector.broadcast %0 : i32 to vector<8x4x5000xi32>
      %23 = arith.addi %21, %22 : vector<8x4x5000xi32>
      %c2500_i32_11 = arith.constant 2500 : i32
      %24 = vector.broadcast %c2500_i32_11 : i32 to vector<8x4x5000xi32>
      %25 = arith.cmpi slt, %23, %24 : vector<8x4x5000xi32>
      %c5000_i32_12 = arith.constant 5000 : i32
      %26 = vector.broadcast %c5000_i32_12 : i32 to vector<8x4x5000xi32>
      %27 = arith.cmpi slt, %23, %26 : vector<8x4x5000xi32>
      %cst = arith.constant dense<true> : vector<8x4x5000xi1>
      %28 = arith.xori %25, %cst : vector<8x4x5000xi1>
      %29 = arith.andi %27, %28 : vector<8x4x5000xi1>
      %c0_13 = arith.constant 0 : index
      %c0_14 = arith.constant 0 : index
      %30 = vector.load %arg11[%c0_13, %c0_14] : memref<8x4xf32, #tpu.memory_space<vmem>>, vector<8x4xf32>
      %cst_15 = arith.constant 0.000000e+00 : f32
      %31 = vector.broadcast %cst_15 : f32 to vector<8x4x5000xf32>
      %32 = arith.select %25, %20, %31 : vector<8x4x5000xi1>, vector<8x4x5000xf32>
      %cst_16 = arith.constant dense<0.000000e+00> : vector<8x4xf32>
      %33 = vector.multi_reduction <add>, %32, %cst_16 [2] : vector<8x4x5000xf32> to vector<8x4xf32>
      %34 = arith.addf %30, %33 : vector<8x4xf32>
      %c0_17 = arith.constant 0 : index
      %c0_18 = arith.constant 0 : index
      %35 = vector.load %arg11[%c0_17, %c0_18] : memref<8x4xf32, #tpu.memory_space<vmem>>, vector<8x4xf32>
      tpu.vector_store %arg11[%c0_17, %c0_18], %34 {strides = array<i32>} : memref<8x4xf32, #tpu.memory_space<vmem>>, vector<8x4xf32>,
      %c0_19 = arith.constant 0 : index
      %c0_20 = arith.constant 0 : index
      %36 = vector.load %arg12[%c0_19, %c0_20] : memref<8x4xf32, #tpu.memory_space<vmem>>, vector<8x4xf32>
      %cst_21 = arith.constant 0.000000e+00 : f32
      %37 = vector.broadcast %cst_21 : f32 to vector<8x4x5000xf32>
      %38 = arith.select %29, %20, %37 : vector<8x4x5000xi1>, vector<8x4x5000xf32>
      %cst_22 = arith.constant dense<0.000000e+00> : vector<8x4xf32>
      %39 = vector.multi_reduction <add>, %38, %cst_22 [2] : vector<8x4x5000xf32> to vector<8x4xf32>
      %40 = arith.addf %36, %39 : vector<8x4xf32>
      %c0_23 = arith.constant 0 : index
      %c0_24 = arith.constant 0 : index
      %41 = vector.load %arg12[%c0_23, %c0_24] : memref<8x4xf32, #tpu.memory_space<vmem>>, vector<8x4xf32>
      tpu.vector_store %arg12[%c0_23, %c0_24], %40 {strides = array<i32>} : memref<8x4xf32, #tpu.memory_space<vmem>>, vector<8x4xf32>,
    } else {
    }
    %c0_i32_7 = arith.constant 0 : i32
    %17 = arith.cmpi eq, %arg1, %c0_i32_7 : i32
    %18 = arith.extui %17 : i1 to i32
    %c0_i32_8 = arith.constant 0 : i32
    %19 = arith.cmpi ne, %18, %c0_i32_8 : i32
    scf.if %19 {
      %c0 = arith.constant 0 : index
      %c0_9 = arith.constant 0 : index
      %20 = vector.load %arg11[%c0, %c0_9] : memref<8x4xf32, #tpu.memory_space<vmem>>, vector<8x4xf32>
      %cst = arith.constant 4.000000e-04 : f32
      %21 = vector.broadcast %cst : f32 to vector<8x4xf32>
      %22 = arith.mulf %20, %21 : vector<8x4xf32>
      %c0_10 = arith.constant 0 : index
      %c0_11 = arith.constant 0 : index
      %23 = vector.load %arg12[%c0_10, %c0_11] : memref<8x4xf32, #tpu.memory_space<vmem>>, vector<8x4xf32>
      %cst_12 = arith.constant 4.000000e-04 : f32
      %24 = vector.broadcast %cst_12 : f32 to vector<8x4xf32>
      %25 = arith.mulf %23, %24 : vector<8x4xf32>
      %26 = tpu.concatenate %22, %25 in 0 : vector<8x4xf32>, vector<8x4xf32> -> vector<16x4xf32>
      %c0_13 = arith.constant 0 : index
      %c0_14 = arith.constant 0 : index
      %27 = vector.load %arg3[%c0_13, %c0_14] : memref<4x256xf32, #tpu.memory_space<vmem>>, vector<4x256xf32>
      %cst_15 = arith.constant dense<0.000000e+00> : vector<16x256xf32>
      %28 = tpu.matmul %26, %27, %cst_15 {dimension_numbers = #tpu.dot_dimension_numbers<[1], [0], [0], [1], [0, 0, 1, 1], [], []>} : vector<16x4xf32>, vector<4x256xf32>, vector<16x256xf32> -> vector<16x256xf32>
      %c0_16 = arith.constant 0 : index
      %c0_17 = arith.constant 0 : index
      %29 = vector.load %arg4[%c0_16, %c0_17] : memref<1x256xf32, #tpu.memory_space<vmem>>, vector<1x256xf32>
      %30 = vector.broadcast %29 : vector<1x256xf32> to vector<16x256xf32>
      %31 = arith.addf %28, %30 : vector<16x256xf32>
      %32 = math.tanh %31 : vector<16x256xf32>
      %33 = vector.extract_strided_slice %32 {offsets = [0, 0], sizes = [8, 256], strides = [1, 1]} : vector<16x256xf32> to vector<8x256xf32>
      %34 = vector.extract_strided_slice %32 {offsets = [8, 0], sizes = [8, 256], strides = [1, 1]} : vector<16x256xf32> to vector<8x256xf32>
      %c0_18 = arith.constant 0 : index
      %c0_19 = arith.constant 0 : index
      %35 = vector.load %arg5[%c0_18, %c0_19] : memref<256x256xf32, #tpu.memory_space<vmem>>, vector<256x256xf32>
      %cst_20 = arith.constant dense<0.000000e+00> : vector<8x256xf32>
      %36 = tpu.matmul %33, %35, %cst_20 {dimension_numbers = #tpu.dot_dimension_numbers<[1], [0], [0], [1], [0, 0, 1, 1], [], []>} : vector<8x256xf32>, vector<256x256xf32>, vector<8x256xf32> -> vector<8x256xf32>
      %c0_21 = arith.constant 0 : index
      %c0_22 = arith.constant 0 : index
      %37 = vector.load %arg6[%c0_21, %c0_22] : memref<256x256xf32, #tpu.memory_space<vmem>>, vector<256x256xf32>
      %cst_23 = arith.constant dense<0.000000e+00> : vector<8x256xf32>
      %38 = tpu.matmul %34, %37, %cst_23 {dimension_numbers = #tpu.dot_dimension_numbers<[1], [0], [0], [1], [0, 0, 1, 1], [], []>} : vector<8x256xf32>, vector<256x256xf32>, vector<8x256xf32> -> vector<8x256xf32>
      %39 = arith.addf %36, %38 : vector<8x256xf32>
      %c0_24 = arith.constant 0 : index
      %c0_25 = arith.constant 0 : index
      %40 = vector.load %arg7[%c0_24, %c0_25] : memref<1x256xf32, #tpu.memory_space<vmem>>, vector<1x256xf32>
      %41 = vector.broadcast %40 : vector<1x256xf32> to vector<8x256xf32>
      %42 = arith.addf %39, %41 : vector<8x256xf32>
      %cst_26 = arith.constant 0.000000e+00 : f32
      %43 = vector.broadcast %cst_26 : f32 to vector<8x256xf32>
      %44 = arith.maximumf %42, %43 : vector<8x256xf32>
      %c0_27 = arith.constant 0 : index
      %c0_28 = arith.constant 0 : index
      %45 = vector.load %arg8[%c0_27, %c0_28] : memref<256x1xf32, #tpu.memory_space<vmem>>, vector<256x1xf32>
      %cst_29 = arith.constant dense<0.000000e+00> : vector<8x1xf32>
      %46 = tpu.matmul %44, %45, %cst_29 {dimension_numbers = #tpu.dot_dimension_numbers<[1], [0], [0], [1], [0, 0, 1, 1], [], []>} : vector<8x256xf32>, vector<256x1xf32>, vector<8x1xf32> -> vector<8x1xf32>
      %c0_30 = arith.constant 0 : index
      %c0_31 = arith.constant 0 : index
      %47 = vector.load %arg9[%c0_30, %c0_31] : memref<1x1xf32, #tpu.memory_space<vmem>>, vector<1x1xf32>
      %48 = vector.broadcast %47 : vector<1x1xf32> to vector<8x1xf32>
      %49 = arith.addf %46, %48 : vector<8x1xf32>
      %50 = arith.negf %49 : vector<8x1xf32>
      %51 = math.exp %50 : vector<8x1xf32>
      %cst_32 = arith.constant 1.000000e+00 : f32
      %52 = vector.broadcast %cst_32 : f32 to vector<8x1xf32>
      %53 = arith.addf %52, %51 : vector<8x1xf32>
      %54 = arith.divf %52, %53 : vector<8x1xf32>
      %c0_33 = arith.constant 0 : index
      %c0_34 = arith.constant 0 : index
      %55 = vector.load %arg10[%c0_33, %c0_34] : memref<8x1xf32, #tpu.memory_space<vmem>>, vector<8x1xf32>
      tpu.vector_store %arg10[%c0_33, %c0_34], %54 {strides = array<i32>} : memref<8x1xf32, #tpu.memory_space<vmem>>, vector<8x1xf32>,
    } else {
    }
    return
  }
  func.func @transform_0(%arg0: i32, %arg1: i32) -> (i32, i32, i32) {
    %c0_i32 = arith.constant 0 : i32
    %c0_i32_0 = arith.constant 0 : i32
    return %arg0, %c0_i32, %arg1 : i32, i32, i32
  }
  func.func @transform_1(%arg0: i32, %arg1: i32) -> (i32, i32) {
    %c0_i32 = arith.constant 0 : i32
    %c0_i32_0 = arith.constant 0 : i32
    %c0_i32_1 = arith.constant 0 : i32
    return %c0_i32, %c0_i32_0 : i32, i32
  }
  func.func @transform_2(%arg0: i32, %arg1: i32) -> (i32, i32) {
    %c0_i32 = arith.constant 0 : i32
    %c0_i32_0 = arith.constant 0 : i32
    %c0_i32_1 = arith.constant 0 : i32
    return %c0_i32, %c0_i32_0 : i32, i32
  }
  func.func @transform_3(%arg0: i32, %arg1: i32) -> (i32, i32) {
    %c0_i32 = arith.constant 0 : i32
    %c0_i32_0 = arith.constant 0 : i32
    %c0_i32_1 = arith.constant 0 : i32
    return %c0_i32, %c0_i32_0 : i32, i32
  }
  func.func @transform_4(%arg0: i32, %arg1: i32) -> (i32, i32) {
    %c0_i32 = arith.constant 0 : i32
    %c0_i32_0 = arith.constant 0 : i32
    %c0_i32_1 = arith.constant 0 : i32
    return %c0_i32, %c0_i32_0 : i32, i32
  }
  func.func @transform_5(%arg0: i32, %arg1: i32) -> (i32, i32) {
    %c0_i32 = arith.constant 0 : i32
    %c0_i32_0 = arith.constant 0 : i32
    %c0_i32_1 = arith.constant 0 : i32
    return %c0_i32, %c0_i32_0 : i32, i32
  }
  func.func @transform_6(%arg0: i32, %arg1: i32) -> (i32, i32) {
    %c0_i32 = arith.constant 0 : i32
    %c0_i32_0 = arith.constant 0 : i32
    %c0_i32_1 = arith.constant 0 : i32
    return %c0_i32, %c0_i32_0 : i32, i32
  }
  func.func @transform_7(%arg0: i32, %arg1: i32) -> (i32, i32) {
    %c0_i32 = arith.constant 0 : i32
    %c0_i32_0 = arith.constant 0 : i32
    %c0_i32_1 = arith.constant 0 : i32
    return %c0_i32, %c0_i32_0 : i32, i32
  }
  func.func @transform_8(%arg0: i32, %arg1: i32) -> (i32, i32) {
    %c0_i32 = arith.constant 0 : i32
    %c0_i32_0 = arith.constant 0 : i32
    return %arg0, %c0_i32 : i32, i32
  }
}

</mosaic_0001>

<bundles_post_ra>
// kernel: tpu_custom_call.1
= control target key start
LH: loop header
LB: loop body
LE: loop exit
PB: predicated region body
PF: predicated region fallthrough
CT: control target
= control target key end

     0   :  { %s7450_s0 = inlined_call_operand.hbm [shape: f32[8,4,5000], index: 0, kind: input, shape index: {}]   ;;  %s7451_s1 = inlined_call_operand.vmem [shape: f32[4,256], index: 1, kind: input, shape index: {}]   ;;  %s7452_s2 = inlined_call_operand.vmem [shape: f32[1,256], index: 2, kind: input, shape index: {}]   ;;  %s7453_s3 = inlined_call_operand.hbm [shape: f32[256,256], index: 3, kind: input, shape index: {}]   ;;  %s7454_s4 = inlined_call_operand.hbm [shape: f32[256,256], index: 4, kind: input, shape index: {}]   ;;  %s7455_s5 = inlined_call_operand.vmem [shape: f32[1,256], index: 5, kind: input, shape index: {}]   ;;  %s7456_s6 = inlined_call_operand.vmem [shape: f32[256,1], index: 6, kind: input, shape index: {}]   ;;  %s7457_s7 = inlined_call_operand.<no memory space> [shape: f32[1,1], index: 7, kind: input, shape index: {}]   ;;  %s7458_s8 = inlined_call_operand.vmem [shape: f32[8,1], index: 8, kind: output, shape index: {}]  }
   0x1   :  { %v13_v0 = vstv %s7457_s7 }
   0x2   :  { %14 = vst [vmem:[#allocation4] sm:$0x1] %v13_v0 }
   0x3   :  { %15 = vsyncpa [#allocation6], 0 }
   0x4   :  { %16 = vsyncpa [#allocation8], 0  ;;  %s6538_s29 = smov [#allocation7]  }
   0x5   :  { %s38_s30 = sshll.u32 %s6538_s29, 4  ;;  %s39_s30 = int_to_ptr.vmem [resolvable:$true] %s38_s30 }
   0x6   :  { %s6482_s9 = scalar_lea.vmem %s39_s30, 8192  ;;  %p6487_p1 = scmp.lt.s32.totalorder %s39_s30, %s39_s30 }
   0x7   :  { %p6483_p0 = scmp.ne.s32.totalorder %s39_s30, %s6482_s9  ;;  %p6488_p2 = scmp.lt.s32.totalorder %s6482_s9, %s6482_s9 }
   0x9   :  { %p6489_p3 = por %p6488_p2, %p6487_p1 }
   0xb   :  { %p6490_p4 = pnand %p6489_p3, %p6483_p0 }
   0xd   :  { %6493 = shalt.err (!%p6490_p4)
}
   0xe   :  { %s6539_s10 = smov 256   ;;  %s6540_s11 = smov 16  }
   0xf   :  { %44 = dma.hbm_to_vmem [thread:$0]  %s7453_s3, 8192, %s39_s30, [#allocation8], %s6539_s10, %s6539_s10, %s6540_s11  }
  0x10   :  { %s6541_s7 = smov [#allocation5]  }
  0x11   :  { %s22_s14 = sshll.u32 %s6541_s7, 4  ;;  %s23_s14 = int_to_ptr.vmem [resolvable:$true] %s22_s14 }
  0x12   :  { %s6502_s15 = scalar_lea.vmem %s23_s14, 20480  ;;  %p6507_p6 = scmp.lt.s32.totalorder %s23_s14, %s23_s14 }
  0x13   :  { %p6503_p5 = scmp.ne.s32.totalorder %s23_s14, %s6502_s15  ;;  %p6508_p7 = scmp.lt.s32.totalorder %s6502_s15, %s6502_s15 }
  0x15   :  { %p6509_p8 = por %p6508_p7, %p6507_p6 }
  0x17   :  { %p6510_p9 = pnand %p6509_p8, %p6503_p5 }
  0x19   :  { %6513 = shalt.err (!%p6510_p9)
}
  0x1a   :  { %s6542_s16 = smov 2560   ;;  %s6543_s17 = smov 160  }
  0x1b   :  { %28 = dma.hbm_to_vmem [thread:$0]  %s7450_s0, 20480, %s23_s14, [#allocation6], %s6542_s16, %s6542_s16, %s6543_s17  }
  0x1c   :  { %s6544_s20 = smov [#allocation9]  }
  0x1d   :  { %s50_s21 = sshll.u32 %s6544_s20, 4  ;;  %s51_s21 = int_to_ptr.vmem [resolvable:$true] %s50_s21 }
  0x1e   :  { %s6522_s3 = scalar_lea.vmem %s51_s21, 8192  ;;  %p6527_p11 = scmp.lt.s32.totalorder %s51_s21, %s51_s21 }
  0x1f   :  { %p6523_p10 = scmp.ne.s32.totalorder %s51_s21, %s6522_s3  ;;  %p6528_p12 = scmp.lt.s32.totalorder %s6522_s3, %s6522_s3 }
  0x21   :  { %p6529_p13 = por %p6528_p12, %p6527_p11 }
  0x23   :  { %p6530_p0 = pnand %p6529_p13, %p6523_p10 }
  0x25   :  { %6533 = shalt.err (!%p6530_p0)
}
  0x26   :  { %56 = dma.hbm_to_vmem [thread:$0]  %s7454_s4, 8192, %s51_s21, [#allocation8], %s6539_s10, %s6539_s10, %s6540_s11  }
  0x27   :  { %6534 = dma.done.wait [#allocation6], 20480  }
  0x28   :  { %6535 = vsyncadd [#allocation6], 4294946816 }
  0x29   :  { %6536 = dma.done.wait [#allocation8], 16384  }
  0x2a   :  { %6537 = vsyncadd [#allocation8], 4294950912  ;;  %v2957_v1 = vlaneseq  ;;  %vm4000_vm0 = vcmask 1043456   ;;  %v2797_v3 = vld [vmem:[#allocation5] sm:$0xff]  ;;  %v2798_v4 = vld [vmem:[#allocation5 + $0x8] sm:$0xff]  ;;  %vm6545_vm2 = vmmov 1  }
  0x2b   :  { %v3360_v5 = vcombine.high %v2797_v3, %v2797_v3  ;;  %v3361_v6 = vcombine.high %v2798_v4, %v2798_v4  ;;  %v4001_v7 = vsel %vm4000_vm0, %v2797_v3, 0.0  ;;  %v2799_v8 = vld [vmem:[#allocation5 + $0x10] sm:$0xff]  ;;  %v6611_v10 = vld [vmem:[#allocation5 + $0x48] sm:$0xff]  ;;  %v4004_v12 = vsel %vm4000_vm0, %v2798_v4, 0.0  ;;  %v2800_v15 = vld [vmem:[#allocation5 + $0x18] sm:$0xff] }
  0x2c   :  { %v6605_v2 = vand.u32 127, %v2957_v1  ;;  %v2807_v13 = vld [vmem:[#allocation5 + $0x50] sm:$0xff]  ;;  %v2801_v16 = vld [vmem:[#allocation5 + $0x20] sm:$0xff]  ;;  %v3362_v17 = vcombine.high %v2799_v8, %v2799_v8  ;;  %v2802_v19 = vld [vmem:[#allocation5 + $0x28] sm:$0xff]  ;;  %v3369_v22 = vcombine.high %v6611_v10, %v6611_v10  ;;  %v4008_v27 = vsel %vm4000_vm0, %v2799_v8, 0.0 }
  0x2d   :  { %v4002_v11 = vsel %vm4000_vm0, %v3360_v5, 0.0  ;;  %v4006_v18 = vsel %vm4000_vm0, %v3361_v6, 0.0  ;;  %v2803_v20 = vld [vmem:[#allocation5 + $0x30] sm:$0xff]  ;;  %v2804_v21 = vld [vmem:[#allocation5 + $0x38] sm:$0xff]  ;;  %v2805_v24 = vld [vmem:[#allocation5 + $0x40] sm:$0xff]  ;;  %v3370_v26 = vcombine.high %v2807_v13, %v2807_v13  ;;  %v3363_v28 = vcombine.high %v2800_v15, %v2800_v15 }
  0x2e   :  { %v6609_v9 = vadd.s32 2432, %v6605_v2  ;;  %v4003_v14 = vadd.f32 %v4002_v11, %v4001_v7  ;;  %v2808_v25 = vld [vmem:[#allocation5 + $0x58] sm:$0xff]  ;;  %v3364_v29 = vcombine.high %v2801_v16, %v2801_v16  ;;  %v2809_v31 = vld [vmem:[#allocation5 + $0x60] sm:$0xff]  ;;  %v2810_v32 = vld [vmem:[#allocation5 + $0x68] sm:$0xff]  ;;  %v3365_v34 = vcombine.high %v2802_v19, %v2802_v19 }
  0x2f   :  { %v3366_v35 = vcombine.high %v2803_v20, %v2803_v20  ;;  %v3367_v36 = vcombine.high %v2804_v21, %v2804_v21  ;;  %v4010_v37 = vsel %vm4000_vm0, %v3362_v17, 0.0  ;;  %v3368_v38 = vcombine.high %v2805_v24, %v2805_v24  ;;  %v2837_v50 = vld [vmem:[#allocation5 + $0x140] sm:$0xff]  ;;  %v2838_v59 = vld [vmem:[#allocation5 + $0x148] sm:$0xff] }
  0x30   :  { %vm3058_vm1 = vcmp.lt.s32.totalorder %v6609_v9, 2500  ;;  %v4005_v23 = vadd.f32 %v4004_v12, %v4003_v14  ;;  %v3371_v39 = vcombine.high %v2808_v25, %v2808_v25  ;;  %v4012_v42 = vsel %vm4000_vm0, %v2800_v15, 0.0  ;;  %v2839_v15 = vld [vmem:[#allocation5 + $0x150] sm:$0xff] }
  0x31   :  { %vm6622_vm3 = vmxor %vm3058_vm1, %vm6545_vm2  ;;  %v5068_v44 = vsel %vm4000_vm0, %v2807_v13, 0.0  ;;  %v5070_v45 = vsel %vm4000_vm0, %v3370_v26, 0.0  ;;  %v3372_v46 = vcombine.high %v2809_v31, %v2809_v31  ;;  %v3373_v47 = vcombine.high %v2810_v32, %v2810_v32  ;;  %v2843_v26 = vld [vmem:[#allocation5 + $0x170] sm:$0xff] }
  0x32   :  { %v4007_v30 = vadd.f32 %v4006_v18, %v4005_v23  ;;  %v4728_v41 = vsel %vm6622_vm3, %v3369_v22, 0.0  ;;  %v3699_v51 = vsel %vm3058_vm1, %v3369_v22, 0.0  ;;  %v4014_v52 = vsel %vm4000_vm0, %v3363_v28, 0.0 }
  0x33   :  { %v5066_v43 = vsel %vm4000_vm0, %v4728_v41, 0.0  ;;  %v4016_v53 = vsel %vm4000_vm0, %v2801_v16, 0.0  ;;  %v5072_v54 = vsel %vm4000_vm0, %v2808_v25, 0.0  ;;  %v4018_v56 = vsel %vm4000_vm0, %v3364_v29, 0.0  ;;  %v2840_v16 = vld [vmem:[#allocation5 + $0x158] sm:$0xff] }
  0x34   :  { %v4009_v40 = vadd.f32 %v4008_v27, %v4007_v30  ;;  %v5069_v49 = vadd.f32 %v5068_v44, %v5066_v43  ;;  %v4020_v57 = vsel %vm4000_vm0, %v2802_v19, 0.0  ;;  %v4022_v60 = vsel %vm4000_vm0, %v3365_v34, 0.0  ;;  %v6669_v27 = vld [vmem:[#allocation5 + $0x188] sm:$0xff]  ;;  %v2844_v30 = vld [vmem:[#allocation5 + $0x178] sm:$0xff] }
  0x35   :  { %v4024_v61 = vsel %vm4000_vm0, %v2803_v20, 0.0  ;;  %v4026_v62 = vsel %vm4000_vm0, %v3366_v35, 0.0  ;;  %v3400_v63 = vcombine.high %v2837_v50, %v2837_v50  ;;  %v6644_v3 = vsel %vm4000_vm0, %v2804_v21, 0.0  ;;  %v2841_v20 = vld [vmem:[#allocation5 + $0x160] sm:$0xff]  ;;  %v2842_v21 = vld [vmem:[#allocation5 + $0x168] sm:$0xff] }
  0x36   :  { %v4011_v48 = vadd.f32 %v4010_v37, %v4009_v40  ;;  %v5071_v58 = vadd.f32 %v5070_v45, %v5069_v49  ;;  %v5074_v5 = vsel %vm4000_vm0, %v3371_v39, 0.0  ;;  %v6648_v6 = vsel %vm4000_vm0, %v3367_v36, 0.0  ;;  %v2848_v39 = vld [vmem:[#allocation5 + $0x198] sm:$0xff]  ;;  %v6675_v40 = vld [vmem:[#allocation5 + $0x1a0] sm:$0xff]  ;;  %v6677_v44 = vld [vmem:[#allocation5 + $0x1a8] sm:$0xff] }
  0x37   :  { %v6651_v7 = vsel %vm4000_vm0, %v2805_v24, 0.0  ;;  %v6654_v8 = vsel %vm4000_vm0, %v3368_v38, 0.0  ;;  %v3401_v11 = vcombine.high %v2838_v59, %v2838_v59  ;;  %v6658_v13 = vsel %vm4000_vm0, %v6611_v10, 0.0  ;;  %v2845_v38 = vld [vmem:[#allocation5 + $0x180] sm:$0xff] }
  0x38   :  { %v4013_v55 = vadd.f32 %v4012_v42, %v4011_v48  ;;  %v5073_v4 = vadd.f32 %v5072_v54, %v5071_v58  ;;  %v6661_v14 = vsel %vm4000_vm0, %v3699_v51, 0.0  ;;  %v4164_v17 = vsel %vm4000_vm0, %v2837_v50, 0.0 }
  0x39   :  { %v5076_v19 = vsel %vm4000_vm0, %v2809_v31, 0.0  ;;  %v4165_v22 = vsel %vm4000_vm0, %v3400_v63, 0.0  ;;  %v4167_v23 = vsel %vm4000_vm0, %v2838_v59, 0.0  ;;  %v5078_v10 = vsel %vm4000_vm0, %v3372_v46, 0.0  ;;  %v2847_v31 = vld [vmem:[#allocation5 + $0x190] sm:$0xff] }
  0x3a   :  { %v4015_v0 = vadd.f32 %v4014_v52, %v4013_v55  ;;  %v5075_v18 = vadd.f32 %v5074_v5, %v5073_v4  ;;  %v5080_v25 = vsel %vm4000_vm0, %v2810_v32, 0.0  ;;  %v4166_v28 = vadd.f32 %v4165_v22, %v4164_v17 }
  0x3b   :  { %v6672_v29 = vsel %vm4000_vm0, %v3373_v47, 0.0  ;;  %v3402_v34 = vcombine.high %v2839_v15, %v2839_v15  ;;  %v3403_v35 = vcombine.high %v2840_v16, %v2840_v16  ;;  %v4169_v36 = vsel %vm4000_vm0, %v3401_v11, 0.0 }
  0x3c   :  { %v4017_v12 = vadd.f32 %v4016_v53, %v4015_v0  ;;  %v3404_v41 = vcombine.high %v2841_v20, %v2841_v20  ;;  %v3405_v32 = vcombine.high %v2842_v21, %v2842_v21  ;;  %v4168_v42 = vadd.f32 %v4167_v23, %v4166_v28 }
  0x3d   :  { %v5077_v43 = vadd.f32 %v5076_v19, %v5075_v18  ;;  %v3406_v45 = vcombine.high %v2843_v26, %v2843_v26  ;;  %v3409_v46 = vcombine.high %v6669_v27, %v6669_v27  ;;  %v4171_v47 = vsel %vm4000_vm0, %v2839_v15, 0.0 }
  0x3e   :  { %v4019_v24 = vadd.f32 %v4018_v56, %v4017_v12  ;;  %v3407_v49 = vcombine.high %v2844_v30, %v2844_v30  ;;  %v3410_v50 = vcombine.high %v2847_v31, %v2847_v31  ;;  %v4170_v51 = vadd.f32 %v4169_v36, %v4168_v42 }
  0x3f   :  { %v3408_v52 = vcombine.high %v2845_v38, %v2845_v38  ;;  %v3411_v53 = vcombine.high %v2848_v39, %v2848_v39  ;;  %v3412_v54 = vcombine.high %v6675_v40, %v6675_v40  ;;  %v4173_v55 = vsel %vm4000_vm0, %v3402_v34, 0.0 }
  0x40   :  { %v4021_v37 = vadd.f32 %v4020_v57, %v4019_v24  ;;  %v3413_v57 = vcombine.high %v6677_v44, %v6677_v44  ;;  %v3779_v58 = vsel %vm3058_vm1, %v3409_v46, 0.0  ;;  %v4172_v59 = vadd.f32 %v4171_v47, %v4170_v51  ;;  %v2820_v51 = vld [vmem:[#allocation5 + $0xb8] sm:$0xff] }
  0x41   :  { %v5079_v63 = vadd.f32 %v5078_v10, %v5077_v43  ;;  %v4808_v0 = vsel %vm6622_vm3, %v3409_v46, 0.0  ;;  %v5230_v4 = vsel %vm4000_vm0, %v2847_v31, 0.0  ;;  %v4177_v15 = vsel %vm4000_vm0, %v3403_v35, 0.0 }
  0x42   :  { %v4023_v48 = vadd.f32 %v4022_v60, %v4021_v37  ;;  %v4175_v60 = vsel %vm4000_vm0, %v2840_v16, 0.0  ;;  %v4174_v11 = vadd.f32 %v4173_v55, %v4172_v59  ;;  %v5228_v12 = vsel %vm4000_vm0, %v4808_v0, 0.0  ;;  %v6739_v59 = vld [vmem:[#allocation5 + $0xe8] sm:$0xff]  ;;  %v2827_v0 = vld [vmem:[#allocation5 + $0xf0] sm:$0xff] }
  0x43   :  { %v4179_v17 = vsel %vm4000_vm0, %v2841_v20, 0.0  ;;  %v4181_v18 = vsel %vm4000_vm0, %v3404_v41, 0.0  ;;  %v5231_v19 = vadd.f32 %v5230_v4, %v5228_v12  ;;  %v4183_v23 = vsel %vm4000_vm0, %v2842_v21, 0.0  ;;  %v2824_v12 = vld [vmem:[#allocation5 + $0xd8] sm:$0xff] }
  0x44   :  { %v4025_v56 = vadd.f32 %v4024_v61, %v4023_v48  ;;  %v5232_v61 = vsel %vm4000_vm0, %v3410_v50, 0.0  ;;  %v4176_v22 = vadd.f32 %v4175_v60, %v4174_v11  ;;  %v5234_v24 = vsel %vm4000_vm0, %v2848_v39, 0.0 }
  0x45   :  { %v5081_v10 = vadd.f32 %v5080_v25, %v5079_v63  ;;  %v4185_v28 = vsel %vm4000_vm0, %v3405_v32, 0.0  ;;  %v4187_v31 = vsel %vm4000_vm0, %v2843_v26, 0.0  ;;  %v5233_v34 = vadd.f32 %v5232_v61, %v5231_v19  ;;  %v2825_v61 = vld [vmem:[#allocation5 + $0xe0] sm:$0xff] }
  0x46   :  { %v4027_v5 = vadd.f32 %v4026_v62, %v4025_v56  ;;  %v2817_v62 = vld [vmem:[#allocation5 + $0xa0] sm:$0xff]  ;;  %v4178_v20 = vadd.f32 %v4177_v15, %v4176_v22  ;;  %v4189_v36 = vsel %vm4000_vm0, %v3406_v45, 0.0  ;;  %v5236_v37 = vsel %vm4000_vm0, %v3411_v53, 0.0  ;;  %v2822_v56 = vld [vmem:[#allocation5 + $0xc8] sm:$0xff] }
  0x47   :  { %v6707_v41 = vsel %vm4000_vm0, %v2844_v30, 0.0  ;;  %v6710_v21 = vsel %vm4000_vm0, %v3407_v49, 0.0  ;;  %v5235_v25 = vadd.f32 %v5234_v24, %v5233_v34  ;;  %v3380_v39 = vcombine.high %v2817_v62, %v2817_v62  ;;  %v6749_v24 = vld [vmem:[#allocation5 + $0x108] sm:$0xff] }
  0x48   :  { %v4029_v16 = vadd.f32 %v6644_v3, %v4027_v5  ;;  %v2818_v3 = vld [vmem:[#allocation5 + $0xa8] sm:$0xff]  ;;  %v4180_v26 = vadd.f32 %v4179_v17, %v4178_v20  ;;  %v6714_v42 = vsel %vm4000_vm0, %v2845_v38, 0.0  ;;  %v6720_v43 = vadd.f32 %v6672_v29, %v5081_v10  ;;  %v2819_v38 = vld [vmem:[#allocation5 + $0xb0] sm:$0xff]  ;;  %v2828_v17 = vld [vmem:[#allocation5 + $0xf8] sm:$0xff] }
  0x49   :  { %v6724_v30 = vsel %vm4000_vm0, %v6669_v27, 0.0  ;;  %v5237_v45 = vadd.f32 %v5236_v37, %v5235_v25  ;;  %v3381_v46 = vcombine.high %v2818_v3, %v2818_v3  ;;  %v4083_v49 = vsel %vm4000_vm0, %v2817_v62, 0.0 }
  0x4a   :  { %v4031_v35 = vadd.f32 %v6648_v6, %v4029_v16  ;;  %v6717_v6 = vsel %vm4000_vm0, %v3408_v52, 0.0  ;;  %v4182_v48 = vadd.f32 %v4181_v18, %v4180_v26  ;;  %v6731_v50 = vsel %vm4000_vm0, %v3779_v58, 0.0  ;;  %v6744_v18 = vld [vmem:[#allocation5 + $0x100] sm:$0xff] }
  0x4b   :  { %v5240_v29 = vsel %vm4000_vm0, %v3412_v54, 0.0  ;;  %v4084_v27 = vsel %vm4000_vm0, %v3380_v39, 0.0  ;;  %v4086_v52 = vsel %vm4000_vm0, %v2818_v3, 0.0  ;;  %v5242_v55 = vsel %vm4000_vm0, %v6677_v44, 0.0  ;;  %v2823_v54 = vld [vmem:[#allocation5 + $0xd0] sm:$0xff] }
  0x4c   :  { %v4033_v32 = vadd.f32 %v6651_v7, %v4031_v35  ;;  %v5238_v7 = vsel %vm4000_vm0, %v6675_v40, 0.0  ;;  %v2821_v40 = vld [vmem:[#allocation5 + $0xc0] sm:$0xff]  ;;  %v4085_v63 = vadd.f32 %v4084_v27, %v4083_v49  ;;  %v5244_v60 = vsel %vm4000_vm0, %v3413_v57, 0.0 }
  0x4d   :  { %v5239_v58 = vadd.f32 %v5238_v7, %v5237_v45  ;;  %v3382_v4 = vcombine.high %v2819_v38, %v2819_v38  ;;  %v4088_v5 = vsel %vm4000_vm0, %v3381_v46, 0.0  ;;  %v3383_v15 = vcombine.high %v2820_v51, %v2820_v51 }
  0x4e   :  { %v4035_v47 = vadd.f32 %v6654_v8, %v4033_v32  ;;  %v4184_v8 = vadd.f32 %v4183_v23, %v4182_v48  ;;  %v4087_v44 = vadd.f32 %v4086_v52, %v4085_v63  ;;  %v3384_v19 = vcombine.high %v2821_v40, %v2821_v40 }
  0x4f   :  { %v3385_v16 = vcombine.high %v2822_v56, %v2822_v56  ;;  %v3389_v57 = vcombine.high %v6739_v59, %v6739_v59  ;;  %v4090_v22 = vsel %vm4000_vm0, %v2819_v38, 0.0  ;;  %v3390_v62 = vcombine.high %v2827_v0, %v2827_v0 }
  0x50   :  { %v4037_v53 = vadd.f32 %v6658_v13, %v4035_v47  ;;  %v4186_v13 = vadd.f32 %v4185_v28, %v4184_v8  ;;  %v4089_v10 = vadd.f32 %v4088_v5, %v4087_v44  ;;  %v5241_v28 = vadd.f32 %v5240_v29, %v5239_v58 }
  0x51   :  { %v3387_v34 = vcombine.high %v2824_v12, %v2824_v12  ;;  %v3388_v35 = vcombine.high %v2825_v61, %v2825_v61  ;;  %v4092_v20 = vsel %vm4000_vm0, %v3382_v4, 0.0  ;;  %v3391_v3 = vcombine.high %v2828_v17, %v2828_v17 }
  0x52   :  { %v4039_v11 = vadd.f32 %v6661_v14, %v4037_v53  ;;  %v4188_v23 = vadd.f32 %v4187_v31, %v4186_v13  ;;  %v3386_v14 = vcombine.high %v2823_v54, %v2823_v54  ;;  %v3392_v25 = vcombine.high %v6744_v18, %v6744_v18 }
  0x53   :  { %v4091_v39 = vadd.f32 %v4090_v22, %v4089_v10  ;;  %v3393_v32 = vcombine.high %v6749_v24, %v6749_v24  ;;  %v4094_v31 = vsel %vm4000_vm0, %v2820_v51, 0.0  ;;  %v4768_v26 = vsel %vm6622_vm3, %v3389_v57, 0.0 }
  0x54   :  { %4081 = vadd.xlane.f32.xlu0 %v4039_v11  ;;  %v4190_v37 = vadd.f32 %v4189_v36, %v4188_v23  ;;  %v5149_v45 = vsel %vm4000_vm0, %v2827_v0, 0.0  ;;  %v5147_v36 = vsel %vm4000_vm0, %v4768_v26, 0.0  ;;  %v5151_v48 = vsel %vm4000_vm0, %v3390_v62, 0.0  ;;  %v2858_v11 = vld [vmem:[#allocation5 + $0x1e8] sm:$0xff]  ;;  %v2863_v26 = vld [vmem:[#allocation5 + $0x210] sm:$0xff] }
  0x55   :  { %v4093_v47 = vadd.f32 %v4092_v20, %v4091_v39  ;;  %v5243_v7 = vadd.f32 %v5242_v55, %v5241_v28  ;;  %v3739_v38 = vsel %vm3058_vm1, %v3389_v57, 0.0  ;;  %v4096_v49 = vsel %vm4000_vm0, %v3383_v15, 0.0  ;;  %v2861_v20 = vld [vmem:[#allocation5 + $0x200] sm:$0xff] }
  0x56   :  { %v4192_v46 = vadd.f32 %v6707_v41, %v4190_v37  ;;  %v5150_v29 = vadd.f32 %v5149_v45, %v5147_v36  ;;  %v4098_v52 = vsel %vm4000_vm0, %v2821_v40, 0.0  ;;  %v5153_v53 = vsel %vm4000_vm0, %v2828_v17, 0.0  ;;  %v2857_v41 = vld [vmem:[#allocation5 + $0x1e0] sm:$0xff]  ;;  %v2862_v37 = vld [vmem:[#allocation5 + $0x208] sm:$0xff]  ;;  %v2867_v45 = vld [vmem:[#allocation5 + $0x230] sm:$0xff] }
  0x57   :  { %v4095_v27 = vadd.f32 %v4094_v31, %v4093_v47  ;;  %v4100_v8 = vsel %vm4000_vm0, %v3384_v19, 0.0  ;;  %v4102_v63 = vsel %vm4000_vm0, %v2822_v56, 0.0  ;;  %v4104_v55 = vsel %vm4000_vm0, %v3385_v16, 0.0 }
  0x58   :  { %v4194_v51 = vadd.f32 %v6710_v21, %v4192_v46  ;;  %v5152_v58 = vadd.f32 %v5151_v48, %v5150_v29  ;;  %v4106_v5 = vsel %vm4000_vm0, %v2823_v54, 0.0  ;;  %v5155_v21 = vsel %vm4000_vm0, %v3391_v3, 0.0  ;;  %v6804_v3 = vld [vmem:[#allocation5 + $0x228] sm:$0xff]  ;;  %v2865_v48 = vld [vmem:[#allocation5 + $0x220] sm:$0xff] }
  0x59   :  { %v4097_v4 = vadd.f32 %v4096_v49, %v4095_v27  ;;  %v6775_v13 = vadd.f32 %v5244_v60, %v5243_v7  ;;  %v4108_v40 = vsel %vm4000_vm0, %v3386_v14, 0.0  ;;  %v3420_v44 = vcombine.high %v2857_v41, %v2857_v41  ;;  %v2859_v14 = vld [vmem:[#allocation5 + $0x1f0] sm:$0xff]  ;;  %v2868_v49 = vld [vmem:[#allocation5 + $0x238] sm:$0xff]  ;;  %v6813_v29 = vld [vmem:[#allocation5 + $0x240] sm:$0xff] }
  0x5a   :  { %v4196_v0 = vadd.f32 %v6714_v42, %v4194_v51  ;;  %v5154_v15 = vadd.f32 %v5153_v53, %v5152_v58  ;;  %v4110_v19 = vsel %vm4000_vm0, %v2824_v12, 0.0  ;;  %v6781_v16 = vsel %vm4000_vm0, %v3387_v34, 0.0 }
  0x5b   :  { %v4099_v56 = vadd.f32 %v4098_v52, %v4097_v4  ;;  %v6784_v42 = vsel %vm4000_vm0, %v2825_v61, 0.0  ;;  %v6787_v54 = vsel %vm4000_vm0, %v3388_v35, 0.0  ;;  %v3421_v57 = vcombine.high %v2858_v11, %v2858_v11  ;;  %v2860_v61 = vld [vmem:[#allocation5 + $0x1f8] sm:$0xff] }
  0x5c   :  { %v4198_v17 = vadd.f32 %v6717_v6, %v4196_v0  ;;  %v5156_v60 = vadd.f32 %v5155_v21, %v5154_v15  ;;  %v6792_v6 = vsel %vm4000_vm0, %v6739_v59, 0.0  ;;  %v5157_v12 = vsel %vm4000_vm0, %v6744_v18, 0.0 }
  0x5d   :  { %v4101_v23 = vadd.f32 %v4100_v8, %v4099_v56  ;;  %v6797_v62 = vsel %vm4000_vm0, %v3739_v38, 0.0  ;;  %v4245_v10 = vsel %vm4000_vm0, %v2857_v41, 0.0  ;;  %v4246_v28 = vsel %vm4000_vm0, %v3420_v44, 0.0  ;;  %v6818_v8 = vld [vmem:[#allocation5 + $0x248] sm:$0xff] }
  0x5e   :  { %v4200_v22 = vadd.f32 %v6724_v30, %v4198_v17  ;;  %v4248_v34 = vsel %vm4000_vm0, %v2858_v11, 0.0  ;;  %v5159_v59 = vsel %vm4000_vm0, %v3392_v25, 0.0  ;;  %v4247_v18 = vadd.f32 %v4246_v28, %v4245_v10  ;;  %v2864_v25 = vld [vmem:[#allocation5 + $0x218] sm:$0xff] }
  0x5f   :  { %v4103_v35 = vadd.f32 %v4102_v63, %v4101_v23  ;;  %v5158_v39 = vadd.f32 %v5157_v12, %v5156_v60  ;;  %v5161_v31 = vsel %vm4000_vm0, %v6749_v24, 0.0  ;;  %v3422_v46 = vcombine.high %v2859_v14, %v2859_v14 }
  0x60   :  { %v4202_v30 = vadd.f32 %v6731_v50, %v4200_v22  ;;  %v4250_v47 = vsel %vm4000_vm0, %v3421_v57, 0.0  ;;  %v5163_v50 = vsel %vm4000_vm0, %v3393_v32, 0.0  ;;  %v3423_v7 = vcombine.high %v2860_v61, %v2860_v61 }
  0x61   :  { %v4105_v36 = vadd.f32 %v4104_v55, %v4103_v35  ;;  %v4249_v38 = vadd.f32 %v4248_v34, %v4247_v18  ;;  %v3424_v51 = vcombine.high %v2861_v20, %v2861_v20  ;;  %v3425_v27 = vcombine.high %v2862_v37, %v2862_v37 }
  0x62   :  { %4243 = vadd.xlane.f32.xlu1 %v4202_v30  ;;  %v3429_v52 = vcombine.high %v6804_v3, %v6804_v3  ;;  %v4252_v53 = vsel %vm4000_vm0, %v2859_v14, 0.0  ;;  %v3426_v24 = vcombine.high %v2863_v26, %v2863_v26  ;;  %v3430_v63 = vcombine.high %v2867_v45, %v2867_v45 }
  0x63   :  { %v4107_v41 = vadd.f32 %v4106_v5, %v4105_v36  ;;  %v4251_v32 = vadd.f32 %v4250_v47, %v4249_v38  ;;  %v5160_v55 = vadd.f32 %v5159_v59, %v5158_v39  ;;  %v3427_v58 = vcombine.high %v2864_v25, %v2864_v25  ;;  %v2878_v36 = vld [vmem:[#allocation5 + $0x288] sm:$0xff] }
  0x64   :  { %v3428_v0 = vcombine.high %v2865_v48, %v2865_v48  ;;  %v4254_v4 = vsel %vm4000_vm0, %v3422_v46, 0.0  ;;  %v3431_v11 = vcombine.high %v2868_v49, %v2868_v49  ;;  %v3432_v15 = vcombine.high %v6813_v29, %v6813_v29 }
  0x65   :  { %v4109_v21 = vadd.f32 %v4108_v40, %v4107_v41  ;;  %v4253_v44 = vadd.f32 %v4252_v53, %v4251_v32  ;;  %v3433_v17 = vcombine.high %v6818_v8, %v6818_v8  ;;  %v4256_v5 = vsel %vm4000_vm0, %v2860_v61, 0.0 }
  0x66   :  { %v4848_v56 = vsel %vm6622_vm3, %v3429_v52, 0.0  ;;  %v5311_v60 = vsel %vm4000_vm0, %v2867_v45, 0.0  ;;  %v5313_v40 = vsel %vm4000_vm0, %v3430_v63, 0.0  ;;  %v5162_v12 = vadd.f32 %v5161_v31, %v5160_v55  ;;  %v2879_v63 = vld [vmem:[#allocation5 + $0x290] sm:$0xff] }
  0x67   :  { %v4111_v57 = vadd.f32 %v4110_v19, %v4109_v21  ;;  %v4255_v22 = vadd.f32 %v4254_v4, %v4253_v44  ;;  %v5309_v23 = vsel %vm4000_vm0, %v4848_v56, 0.0  ;;  %v3819_v14 = vsel %vm3058_vm1, %v3429_v52, 0.0  ;;  %v2877_v19 = vld [vmem:[#allocation5 + $0x280] sm:$0xff]  ;;  %v6872_v44 = vld [vmem:[#allocation5 + $0x2c8] sm:$0xff] }
  0x68   :  { %v4258_v10 = vsel %vm4000_vm0, %v3423_v7, 0.0  ;;  %v5312_v28 = vadd.f32 %v5311_v60, %v5309_v23  ;;  %v4260_v30 = vsel %vm4000_vm0, %v2861_v20, 0.0  ;;  %v5315_v35 = vsel %vm4000_vm0, %v2868_v49, 0.0  ;;  %v2881_v21 = vld [vmem:[#allocation5 + $0x2a0] sm:$0xff]  ;;  %v2883_v60 = vld [vmem:[#allocation5 + $0x2b0] sm:$0xff] }
  0x69   :  { %v4113_v61 = vadd.f32 %v6781_v16, %v4111_v57  ;;  %v4257_v34 = vadd.f32 %v4256_v5, %v4255_v22  ;;  %v4262_v59 = vsel %vm4000_vm0, %v3424_v51, 0.0  ;;  %v4264_v18 = vsel %vm4000_vm0, %v2862_v37, 0.0  ;;  %v2887_v57 = vld [vmem:[#allocation5 + $0x2d0] sm:$0xff] }
  0x6a   :  { %v4266_v39 = vsel %vm4000_vm0, %v3425_v27, 0.0  ;;  %v5314_v31 = vadd.f32 %v5313_v40, %v5312_v28  ;;  %v4268_v47 = vsel %vm4000_vm0, %v2863_v26, 0.0  ;;  %v5317_v16 = vsel %vm4000_vm0, %v3431_v11, 0.0  ;;  %v2882_v11 = vld [vmem:[#allocation5 + $0x2a8] sm:$0xff]  ;;  %v2888_v28 = vld [vmem:[#allocation5 + $0x2d8] sm:$0xff] }
  0x6b   :  { %v4115_v45 = vadd.f32 %v6784_v42, %v4113_v61  ;;  %v4259_v46 = vadd.f32 %v4258_v10, %v4257_v34  ;;  %v6843_v7 = vadd.f32 %v5163_v50, %v5162_v12  ;;  %v4270_v20 = vsel %vm4000_vm0, %v3426_v24, 0.0  ;;  %v2885_v12 = vld [vmem:[#allocation5 + $0x2c0] sm:$0xff] }
  0x6c   :  { %v5316_v38 = vadd.f32 %v5315_v35, %v5314_v31  ;;  %v3440_v49 = vcombine.high %v2877_v19, %v2877_v19  ;;  %v4272_v27 = vsel %vm4000_vm0, %v2864_v25, 0.0  ;;  %v6849_v52 = vsel %vm4000_vm0, %v3427_v58, 0.0  ;;  %v6881_v61 = vld [vmem:[#allocation5 + $0x2e0] sm:$0xff] }
  0x6d   :  { %v4117_v51 = vadd.f32 %v6787_v54, %v4115_v45  ;;  %v4261_v37 = vadd.f32 %v4260_v30, %v4259_v46  ;;  %v6852_v42 = vsel %vm4000_vm0, %v2865_v48, 0.0  ;;  %v6855_v26 = vsel %vm4000_vm0, %v3428_v0, 0.0  ;;  %v2880_v48 = vld [vmem:[#allocation5 + $0x298] sm:$0xff] }
  0x6e   :  { %v5318_v50 = vadd.f32 %v5317_v16, %v5316_v38  ;;  %v3441_v53 = vcombine.high %v2878_v36, %v2878_v36  ;;  %v6860_v54 = vsel %vm4000_vm0, %v6804_v3, 0.0  ;;  %v5319_v25 = vsel %vm4000_vm0, %v6813_v29, 0.0 }
  0x6f   :  { %v4119_v41 = vadd.f32 %v6792_v6, %v4117_v51  ;;  %v4263_v24 = vadd.f32 %v4262_v59, %v4261_v37  ;;  %v6865_v32 = vsel %vm4000_vm0, %v3819_v14, 0.0  ;;  %v4326_v55 = vsel %vm4000_vm0, %v2877_v19, 0.0 }
  0x70   :  { %v4327_v58 = vsel %vm4000_vm0, %v3440_v49, 0.0  ;;  %v4329_v0 = vsel %vm4000_vm0, %v2878_v36, 0.0  ;;  %v5321_v3 = vsel %vm4000_vm0, %v3432_v15, 0.0  ;;  %v5320_v5 = vadd.f32 %v5319_v25, %v5318_v50  ;;  %v2884_v15 = vld [vmem:[#allocation5 + $0x2b8] sm:$0xff] }
  0x71   :  { %v4121_v6 = vadd.f32 %v6797_v62, %v4119_v41  ;;  %v4265_v4 = vadd.f32 %v4264_v18, %v4263_v24  ;;  %v4328_v29 = vadd.f32 %v4327_v58, %v4326_v55  ;;  %v5323_v56 = vsel %vm4000_vm0, %v6818_v8, 0.0  ;;  %v6886_v18 = vld [vmem:[#allocation5 + $0x2e8] sm:$0xff] }
  0x72   :  { %v3442_v22 = vcombine.high %v2879_v63, %v2879_v63  ;;  %v4331_v23 = vsel %vm4000_vm0, %v3441_v53, 0.0  ;;  %v5325_v62 = vsel %vm4000_vm0, %v3433_v17, 0.0  ;;  %v3443_v14 = vcombine.high %v2880_v48, %v2880_v48 }
  0x73   :  { %4162 = vadd.xlane.f32.xlu0 %v4121_v6  ;;  %v4267_v40 = vadd.f32 %v4266_v39, %v4265_v4  ;;  %v4330_v10 = vadd.f32 %v4329_v0, %v4328_v29  ;;  %v3444_v34 = vcombine.high %v2881_v21, %v2881_v21  ;;  %v3445_v30 = vcombine.high %v2882_v11, %v2882_v11 }
  0x74   :  { %v3449_v35 = vcombine.high %v6872_v44, %v6872_v44  ;;  %v4333_v19 = vsel %vm4000_vm0, %v2879_v63, 0.0  ;;  %v3446_v8 = vcombine.high %v2883_v60, %v2883_v60  ;;  %v3450_v39 = vcombine.high %v2887_v57, %v2887_v57 }
  0x75   :  { %v4269_v59 = vadd.f32 %v4268_v47, %v4267_v40  ;;  %v4332_v17 = vadd.f32 %v4331_v23, %v4330_v10  ;;  %v5322_v31 = vadd.f32 %v5321_v3, %v5320_v5  ;;  %v3447_v45 = vcombine.high %v2884_v15, %v2884_v15 }
  0x76   :  { %v3448_v46 = vcombine.high %v2885_v12, %v2885_v12  ;;  %v4335_v16 = vsel %vm4000_vm0, %v3442_v22, 0.0  ;;  %v3451_v38 = vcombine.high %v2888_v28, %v2888_v28  ;;  %v3452_v49 = vcombine.high %v6881_v61, %v6881_v61 }
  0x77   :  { %v4271_v36 = vadd.f32 %v4270_v20, %v4269_v59  ;;  %v4334_v51 = vadd.f32 %v4333_v19, %v4332_v17  ;;  %v3453_v37 = vcombine.high %v6886_v18, %v6886_v18  ;;  %v4337_v47 = vsel %vm4000_vm0, %v2880_v48, 0.0  ;;  %v2899_v17 = vld [vmem:[#allocation5 + $0x330] sm:$0xff] }
  0x78   :  { %v4888_v50 = vsel %vm6622_vm3, %v3449_v35, 0.0  ;;  %v5392_v53 = vsel %vm4000_vm0, %v2887_v57, 0.0  ;;  %v5394_v20 = vsel %vm4000_vm0, %v3450_v39, 0.0  ;;  %v5324_v63 = vadd.f32 %v5323_v56, %v5322_v31 }
  0x79   :  { %v4273_v41 = vadd.f32 %v4272_v27, %v4271_v36  ;;  %v4336_v24 = vadd.f32 %v4335_v16, %v4334_v51  ;;  %v5390_v25 = vsel %vm4000_vm0, %v4888_v50, 0.0  ;;  %v3859_v55 = vsel %vm3058_vm1, %v3449_v35, 0.0  ;;  %v2897_v27 = vld [vmem:[#allocation5 + $0x320] sm:$0xff]  ;;  %v2902_v51 = vld [vmem:[#allocation5 + $0x348] sm:$0xff] }
  0x7a   :  { %v4339_v58 = vsel %vm4000_vm0, %v3443_v14, 0.0  ;;  %v5393_v0 = vadd.f32 %v5392_v53, %v5390_v25  ;;  %v4341_v4 = vsel %vm4000_vm0, %v2881_v21, 0.0  ;;  %v5396_v3 = vsel %vm4000_vm0, %v2888_v28, 0.0  ;;  %v2898_v14 = vld [vmem:[#allocation5 + $0x328] sm:$0xff] }
  0x7b   :  { %v4275_v48 = vadd.f32 %v6849_v52, %v4273_v41  ;;  %v4338_v6 = vadd.f32 %v4337_v47, %v4336_v24  ;;  %v4343_v29 = vsel %vm4000_vm0, %v3444_v34, 0.0  ;;  %v4345_v5 = vsel %vm4000_vm0, %v2882_v11, 0.0  ;;  %v6940_v47 = vld [vmem:[#allocation5 + $0x368] sm:$0xff]  ;;  %v2903_v41 = vld [vmem:[#allocation5 + $0x350] sm:$0xff] }
  0x7c   :  { %v4347_v56 = vsel %vm4000_vm0, %v3445_v30, 0.0  ;;  %v5395_v57 = vadd.f32 %v5394_v20, %v5393_v0  ;;  %v4349_v40 = vsel %vm4000_vm0, %v2883_v60, 0.0  ;;  %v5398_v52 = vsel %vm4000_vm0, %v3451_v38, 0.0  ;;  %v2901_v38 = vld [vmem:[#allocation5 + $0x340] sm:$0xff]  ;;  %v2907_v24 = vld [vmem:[#allocation5 + $0x370] sm:$0xff] }
  0x7d   :  { %v4277_v22 = vadd.f32 %v6852_v42, %v4275_v48  ;;  %v4340_v23 = vadd.f32 %v4339_v58, %v4338_v6  ;;  %v6911_v10 = vadd.f32 %v5325_v62, %v5324_v63  ;;  %v4351_v21 = vsel %vm4000_vm0, %v3446_v8, 0.0  ;;  %v2908_v48 = vld [vmem:[#allocation5 + $0x378] sm:$0xff]  ;;  %v6949_v6 = vld [vmem:[#allocation5 + $0x380] sm:$0xff] }
  0x7e   :  { %v5397_v28 = vadd.f32 %v5396_v3, %v5395_v57  ;;  %v3460_v35 = vcombine.high %v2897_v27, %v2897_v27  ;;  %v4353_v30 = vsel %vm4000_vm0, %v2884_v15, 0.0  ;;  %v6917_v19 = vsel %vm4000_vm0, %v3447_v45, 0.0 }
  0x7f   :  { %v4279_v34 = vadd.f32 %v6855_v26, %v4277_v22  ;;  %v4342_v11 = vadd.f32 %v4341_v4, %v4340_v23  ;;  %v6920_v42 = vsel %vm4000_vm0, %v2885_v12, 0.0  ;;  %v6923_v60 = vsel %vm4000_vm0, %v3448_v46, 0.0  ;;  %v2900_v12 = vld [vmem:[#allocation5 + $0x338] sm:$0xff] }
  0x80   :  { %v5399_v62 = vadd.f32 %v5398_v52, %v5397_v28  ;;  %v3461_v59 = vcombine.high %v2898_v14, %v2898_v14  ;;  %v6928_v26 = vsel %vm4000_vm0, %v6872_v44, 0.0  ;;  %v5400_v15 = vsel %vm4000_vm0, %v6881_v61, 0.0 }
  0x81   :  { %v4281_v8 = vadd.f32 %v6860_v54, %v4279_v34  ;;  %v4344_v39 = vadd.f32 %v4343_v29, %v4342_v11  ;;  %v6933_v31 = vsel %vm4000_vm0, %v3859_v55, 0.0  ;;  %v4407_v45 = vsel %vm4000_vm0, %v2897_v27, 0.0  ;;  %v2905_v55 = vld [vmem:[#allocation5 + $0x360] sm:$0xff] }
  0x82   :  { %v4408_v46 = vsel %vm4000_vm0, %v3460_v35, 0.0  ;;  %v4410_v16 = vsel %vm4000_vm0, %v2898_v14, 0.0  ;;  %v5402_v44 = vsel %vm4000_vm0, %v3452_v49, 0.0  ;;  %v5401_v50 = vadd.f32 %v5400_v15, %v5399_v62  ;;  %v2904_v49 = vld [vmem:[#allocation5 + $0x358] sm:$0xff] }
  0x83   :  { %v4283_v54 = vadd.f32 %v6865_v32, %v4281_v8  ;;  %v4346_v36 = vadd.f32 %v4345_v5, %v4344_v39  ;;  %v4409_v61 = vadd.f32 %v4408_v46, %v4407_v45  ;;  %v5404_v53 = vsel %vm4000_vm0, %v6886_v18, 0.0 }
  0x84   :  { %v3462_v25 = vcombine.high %v2899_v17, %v2899_v17  ;;  %v4412_v20 = vsel %vm4000_vm0, %v3461_v59, 0.0  ;;  %v5406_v32 = vsel %vm4000_vm0, %v3453_v37, 0.0  ;;  %v3463_v58 = vcombine.high %v2900_v12, %v2900_v12 }
  0x85   :  { %4324 = vadd.xlane.f32.xlu1 %v4283_v54  ;;  %v4348_v63 = vadd.f32 %v4347_v56, %v4346_v36  ;;  %v4411_v0 = vadd.f32 %v4410_v16, %v4409_v61  ;;  %v3464_v4 = vcombine.high %v2901_v38, %v2901_v38  ;;  %v3465_v3 = vcombine.high %v2902_v51, %v2902_v51  ;;  %v6954_v56 = vld [vmem:[#allocation5 + $0x388] sm:$0xff] }
  0x86   :  { %v3469_v27 = vcombine.high %v6940_v47, %v6940_v47  ;;  %v4414_v29 = vsel %vm4000_vm0, %v2899_v17, 0.0  ;;  %v3466_v18 = vcombine.high %v2903_v41, %v2903_v41  ;;  %v3470_v57 = vcombine.high %v2907_v24, %v2907_v24 }
  0x87   :  { %v4350_v5 = vadd.f32 %v4349_v40, %v4348_v63  ;;  %v4413_v37 = vadd.f32 %v4412_v20, %v4411_v0  ;;  %v5403_v22 = vadd.f32 %v5402_v44, %v5401_v50  ;;  %v3467_v23 = vcombine.high %v2904_v49, %v2904_v49  ;;  %v2918_v0 = vld [vmem:[#allocation5 + $0x3c8] sm:$0xff] }
  0x88   :  { %v3468_v52 = vcombine.high %v2905_v55, %v2905_v55  ;;  %v4416_v14 = vsel %vm4000_vm0, %v3462_v25, 0.0  ;;  %v3471_v35 = vcombine.high %v2908_v48, %v2908_v48  ;;  %v3472_v34 = vcombine.high %v6949_v6, %v6949_v6 }
  0x89   :  { %v4352_v28 = vadd.f32 %v4351_v21, %v4350_v5  ;;  %v4415_v11 = vadd.f32 %v4414_v29, %v4413_v37  ;;  %v3473_v62 = vcombine.high %v6954_v56, %v6954_v56  ;;  %v4418_v40 = vsel %vm4000_vm0, %v2900_v12, 0.0 }
  0x8a   :  { %v4928_v59 = vsel %vm6622_vm3, %v3469_v27, 0.0  ;;  %v5473_v8 = vsel %vm4000_vm0, %v2907_v24, 0.0  ;;  %v5475_v21 = vsel %vm4000_vm0, %v3470_v57, 0.0  ;;  %v5405_v45 = vadd.f32 %v5404_v53, %v5403_v22  ;;  %v2919_v22 = vld [vmem:[#allocation5 + $0x3d0] sm:$0xff] }
  0x8b   :  { %v4354_v39 = vadd.f32 %v4353_v30, %v4352_v28  ;;  %v4417_v15 = vadd.f32 %v4416_v14, %v4415_v11  ;;  %v5471_v17 = vsel %vm4000_vm0, %v4928_v59, 0.0  ;;  %v3899_v46 = vsel %vm3058_vm1, %v3469_v27, 0.0  ;;  %v2917_v30 = vld [vmem:[#allocation5 + $0x3c0] sm:$0xff]  ;;  %v7008_v59 = vld [vmem:[#allocation5 + $0x408] sm:$0xff] }
  0x8c   :  { %v4420_v16 = vsel %vm4000_vm0, %v3463_v58, 0.0  ;;  %v5474_v54 = vadd.f32 %v5473_v8, %v5471_v17  ;;  %v4422_v44 = vsel %vm4000_vm0, %v2901_v38, 0.0  ;;  %v5477_v61 = vsel %vm4000_vm0, %v2908_v48, 0.0  ;;  %v2921_v11 = vld [vmem:[#allocation5 + $0x3e0] sm:$0xff]  ;;  %v2927_v17 = vld [vmem:[#allocation5 + $0x410] sm:$0xff] }
  0x8d   :  { %v4356_v12 = vadd.f32 %v6917_v19, %v4354_v39  ;;  %v4419_v36 = vadd.f32 %v4418_v40, %v4417_v15  ;;  %v4424_v50 = vsel %vm4000_vm0, %v3464_v4, 0.0  ;;  %v4426_v24 = vsel %vm4000_vm0, %v2902_v51, 0.0  ;;  %v2922_v40 = vld [vmem:[#allocation5 + $0x3e8] sm:$0xff]  ;;  %v2923_v15 = vld [vmem:[#allocation5 + $0x3f0] sm:$0xff] }
  0x8e   :  { %v4428_v53 = vsel %vm4000_vm0, %v3465_v3, 0.0  ;;  %v5476_v25 = vadd.f32 %v5475_v21, %v5474_v54  ;;  %v4430_v58 = vsel %vm4000_vm0, %v2903_v41, 0.0  ;;  %v5479_v19 = vsel %vm4000_vm0, %v3471_v35, 0.0 }
  0x8f   :  { %v4358_v20 = vadd.f32 %v6920_v42, %v4356_v12  ;;  %v4421_v63 = vadd.f32 %v4420_v16, %v4419_v36  ;;  %v6979_v27 = vadd.f32 %v5406_v32, %v5405_v45  ;;  %v4432_v38 = vsel %vm4000_vm0, %v3466_v18, 0.0  ;;  %v7019_v16 = vld [vmem:[#allocation5 + $0x400] sm:$0xff]  ;;  %v2928_v36 = vld [vmem:[#allocation5 + $0x418] sm:$0xff] }
  0x90   :  { %v5478_v48 = vadd.f32 %v5477_v61, %v5476_v25  ;;  %v3480_v29 = vcombine.high %v2917_v30, %v2917_v30  ;;  %v4434_v3 = vsel %vm4000_vm0, %v2904_v49, 0.0  ;;  %v6985_v5 = vsel %vm4000_vm0, %v3467_v23, 0.0 }
  0x91   :  { %v4360_v4 = vadd.f32 %v6923_v60, %v4358_v20  ;;  %v4423_v51 = vadd.f32 %v4422_v44, %v4421_v63  ;;  %v6988_v42 = vsel %vm4000_vm0, %v2905_v55, 0.0  ;;  %v6991_v41 = vsel %vm4000_vm0, %v3468_v52, 0.0  ;;  %v2920_v55 = vld [vmem:[#allocation5 + $0x3d8] sm:$0xff]  ;;  %v7021_v44 = vld [vmem:[#allocation5 + $0x420] sm:$0xff] }
  0x92   :  { %v5480_v32 = vadd.f32 %v5479_v19, %v5478_v48  ;;  %v3481_v57 = vcombine.high %v2918_v0, %v2918_v0  ;;  %v6996_v60 = vsel %vm4000_vm0, %v6940_v47, 0.0  ;;  %v5481_v49 = vsel %vm4000_vm0, %v6949_v6, 0.0 }
  0x93   :  { %v4362_v18 = vadd.f32 %v6928_v26, %v4360_v4  ;;  %v4425_v37 = vadd.f32 %v4424_v50, %v4423_v51  ;;  %v7001_v23 = vsel %vm4000_vm0, %v3899_v46, 0.0  ;;  %v4488_v52 = vsel %vm4000_vm0, %v2917_v30, 0.0 }
  0x94   :  { %v4489_v14 = vsel %vm4000_vm0, %v3480_v29, 0.0  ;;  %v4491_v28 = vsel %vm4000_vm0, %v2918_v0, 0.0  ;;  %v5483_v47 = vsel %vm4000_vm0, %v3472_v34, 0.0  ;;  %v5482_v8 = vadd.f32 %v5481_v49, %v5480_v32  ;;  %v7017_v34 = vld [vmem:[#allocation5 + $0x3f8] sm:$0xff] }
  0x95   :  { %v4364_v26 = vadd.f32 %v6933_v31, %v4362_v18  ;;  %v4427_v35 = vadd.f32 %v4426_v24, %v4425_v37  ;;  %v4490_v6 = vadd.f32 %v4489_v14, %v4488_v52  ;;  %v5485_v39 = vsel %vm4000_vm0, %v6954_v56, 0.0  ;;  %v7026_v56 = vld [vmem:[#allocation5 + $0x428] sm:$0xff]  ;;  %v2831_v14 = vld [vmem:[#allocation5 + $0x110] sm:$0xff] }
  0x96   :  { %v3482_v21 = vcombine.high %v2919_v22, %v2919_v22  ;;  %v4493_v45 = vsel %vm4000_vm0, %v3481_v57, 0.0  ;;  %v5487_v31 = vsel %vm4000_vm0, %v3473_v62, 0.0  ;;  %v3483_v54 = vcombine.high %v2920_v55, %v2920_v55 }
  0x97   :  { %4405 = vadd.xlane.f32.xlu0 %v4364_v26  ;;  %v4429_v46 = vadd.f32 %v4428_v53, %v4427_v35  ;;  %v4492_v12 = vadd.f32 %v4491_v28, %v4490_v6  ;;  %v3484_v61 = vcombine.high %v2921_v11, %v2921_v11  ;;  %v3485_v30 = vcombine.high %v2922_v40, %v2922_v40 }
  0x98   :  { %v3489_v50 = vcombine.high %v7008_v59, %v7008_v59  ;;  %v4495_v24 = vsel %vm4000_vm0, %v2919_v22, 0.0  ;;  %v3486_v62 = vcombine.high %v2923_v15, %v2923_v15  ;;  %v3490_v25 = vcombine.high %v2927_v17, %v2927_v17 }
  0x99   :  { %v4431_v53 = vadd.f32 %v4430_v58, %v4429_v46  ;;  %v4494_v20 = vadd.f32 %v4493_v45, %v4492_v12  ;;  %v5484_v63 = vadd.f32 %v5483_v47, %v5482_v8  ;;  %v3487_v19 = vcombine.high %v7017_v34, %v7017_v34  ;;  %v2832_v46 = vld [vmem:[#allocation5 + $0x118] sm:$0xff] }
  0x9a   :  { %v3488_v0 = vcombine.high %v7019_v16, %v7019_v16  ;;  %v4497_v48 = vsel %vm4000_vm0, %v3482_v21, 0.0  ;;  %v3491_v4 = vcombine.high %v2928_v36, %v2928_v36  ;;  %v3492_v51 = vcombine.high %v7021_v44, %v7021_v44 }
  0x9b   :  { %v4433_v29 = vadd.f32 %v4432_v38, %v4431_v53  ;;  %v4496_v58 = vadd.f32 %v4495_v24, %v4494_v20  ;;  %v3493_v32 = vcombine.high %v7026_v56, %v7026_v56  ;;  %v4499_v57 = vsel %vm4000_vm0, %v2920_v55, 0.0 }
  0x9c   :  { %v4968_v18 = vsel %vm6622_vm3, %v3489_v50, 0.0  ;;  %v5554_v37 = vsel %vm4000_vm0, %v2927_v17, 0.0  ;;  %v5556_v38 = vsel %vm4000_vm0, %v3490_v25, 0.0  ;;  %v5486_v28 = vadd.f32 %v5485_v39, %v5484_v63 }
  0x9d   :  { %v4435_v49 = vadd.f32 %v4434_v3, %v4433_v29  ;;  %v4498_v22 = vadd.f32 %v4497_v48, %v4496_v58  ;;  %v5552_v52 = vsel %vm4000_vm0, %v4968_v18, 0.0  ;;  %v3939_v26 = vsel %vm3058_vm1, %v3489_v50, 0.0 }
  0x9e   :  { %v4501_v35 = vsel %vm4000_vm0, %v3483_v54, 0.0  ;;  %v5555_v47 = vadd.f32 %v5554_v37, %v5552_v52  ;;  %v4503_v8 = vsel %vm4000_vm0, %v2921_v11, 0.0  ;;  %v5558_v3 = vsel %vm4000_vm0, %v2928_v36, 0.0  ;;  %v2836_v37 = vld [vmem:[#allocation5 + $0x138] sm:$0xff] }
  0x9f   :  { %v4437_v55 = vadd.f32 %v6985_v5, %v4435_v49  ;;  %v4500_v6 = vadd.f32 %v4499_v57, %v4498_v22  ;;  %v4505_v17 = vsel %vm4000_vm0, %v3484_v61, 0.0  ;;  %v4507_v21 = vsel %vm4000_vm0, %v2922_v40, 0.0 }
  0xa0   :  { %v5557_v45 = vadd.f32 %v5556_v38, %v5555_v47  ;;  %v3394_v39 = vcombine.high %v2831_v14, %v2831_v14  ;;  %v4509_v54 = vsel %vm4000_vm0, %v3485_v30, 0.0  ;;  %v5560_v24 = vsel %vm4000_vm0, %v3491_v4, 0.0  ;;  %v2833_v30 = vld [vmem:[#allocation5 + $0x120] sm:$0xff]  ;;  %v2835_v38 = vld [vmem:[#allocation5 + $0x130] sm:$0xff] }
  0xa1   :  { %v4439_v12 = vadd.f32 %v6988_v42, %v4437_v55  ;;  %v4502_v50 = vadd.f32 %v4501_v35, %v4500_v6  ;;  %v7054_v5 = vadd.f32 %v5487_v31, %v5486_v28  ;;  %v4511_v11 = vsel %vm4000_vm0, %v2923_v15, 0.0  ;;  %v2937_v28 = vld [vmem:[#allocation5 + $0x460] sm:$0xff] }
  0xa2   :  { %v4513_v36 = vsel %vm4000_vm0, %v3486_v62, 0.0  ;;  %v5559_v53 = vadd.f32 %v5558_v3, %v5557_v45  ;;  %v3395_v25 = vcombine.high %v2832_v46, %v2832_v46  ;;  %v5165_v20 = vsel %vm4000_vm0, %v2831_v14, 0.0 }
  0xa3   :  { %v4441_v61 = vadd.f32 %v6991_v41, %v4439_v12  ;;  %v4504_v40 = vadd.f32 %v4503_v8, %v4502_v50  ;;  %v4515_v42 = vsel %vm4000_vm0, %v7017_v34, 0.0  ;;  %v5166_v48 = vadd.f32 %v5165_v20, %v6843_v7  ;;  %v2938_v8 = vld [vmem:[#allocation5 + $0x468] sm:$0xff] }
  0xa4   :  { %v5561_v63 = vadd.f32 %v5560_v24, %v5559_v53  ;;  %v5167_v31 = vsel %vm4000_vm0, %v3394_v39, 0.0  ;;  %v5562_v62 = vsel %vm4000_vm0, %v7021_v44, 0.0  ;;  %v5169_v41 = vsel %vm4000_vm0, %v2832_v46, 0.0 }
  0xa5   :  { %v4443_v15 = vadd.f32 %v6996_v60, %v4441_v61  ;;  %v4506_v29 = vadd.f32 %v4505_v17, %v4504_v40  ;;  %v4517_v4 = vsel %vm4000_vm0, %v3487_v19, 0.0  ;;  %v7071_v58 = vsel %vm4000_vm0, %v7019_v16, 0.0  ;;  %v2834_v60 = vld [vmem:[#allocation5 + $0x128] sm:$0xff]  ;;  %v2939_v61 = vld [vmem:[#allocation5 + $0x470] sm:$0xff] }
  0xa6   :  { %v7074_v34 = vadd.s32 4992, %v6605_v2  ;;  %v5168_v7 = vadd.f32 %v5167_v31, %v5166_v48  ;;  %v3396_v49 = vcombine.high %v2833_v30, %v2833_v30  ;;  %v5171_v22 = vsel %vm4000_vm0, %v3395_v25, 0.0  ;;  %v2940_v25 = vld [vmem:[#allocation5 + $0x478] sm:$0xff]  ;;  %v7109_v48 = vld [vmem:[#allocation5 + $0x4a8] sm:$0xff] }
  0xa7   :  { %v4445_v57 = vadd.f32 %v7001_v23, %v4443_v15  ;;  %v4508_v18 = vadd.f32 %v4507_v21, %v4506_v29  ;;  %v7079_v52 = vsel %vm4000_vm0, %v3488_v0, 0.0  ;;  %v7083_v19 = vsel %vm4000_vm0, %v7008_v59, 0.0 }
  0xa8   :  { %v5563_v16 = vadd.f32 %v5562_v62, %v5561_v63  ;;  %v5170_v14 = vadd.f32 %v5169_v41, %v5168_v7  ;;  %v7086_v23 = vsel %vm4000_vm0, %v3939_v26, 0.0  ;;  %v5564_v47 = vsel %vm4000_vm0, %v3492_v51, 0.0  ;;  %v2942_v41 = vld [vmem:[#allocation5 + $0x488] sm:$0xff] }
  0xa9   :  { %4486 = vadd.xlane.f32.xlu1 %v4445_v57  ;;  %v4510_v35 = vadd.f32 %v4509_v54, %v4508_v18  ;;  %v5173_v0 = vsel %vm4000_vm0, %v2833_v30, 0.0  ;;  %vm3118_vm4 = vcmp.lt.s32.totalorder %v7074_v34, 5000  ;;  %v3397_v59 = vcombine.high %v2834_v60, %v2834_v60  ;;  %v2941_v30 = vld [vmem:[#allocation5 + $0x480] sm:$0xff]  ;;  %v5734_v34 = vld [vmem:[%s7451_s1] sm:$0xff] }
  0xaa   :  { %v3399_v55 = vcombine.high %v2836_v37, %v2836_v37  ;;  %v5172_v6 = vadd.f32 %v5171_v22, %v5170_v14  ;;  %v3398_v17 = vcombine.high %v2835_v38, %v2835_v38  ;;  %v5175_v21 = vsel %vm4000_vm0, %v3396_v49, 0.0  ;;  %v2947_v49 = vld [vmem:[#allocation5 + $0x4b0] sm:$0xff]  ;;  %v2944_v14 = vld [vmem:[#allocation5 + $0x498] sm:$0xff] }
  0xab   :  { %v4512_v3 = vadd.f32 %v4511_v11, %v4510_v35  ;;  %v3500_v45 = vcombine.high %v2937_v28, %v2937_v28  ;;  %v5565_v26 = vadd.f32 %v5564_v47, %v5563_v16  ;;  %v5566_v46 = vsel %vm4000_vm0, %v7026_v56, 0.0 }
  0xac   :  { %v5568_v44 = vsel %vm4000_vm0, %v3493_v32, 0.0  ;;  %v5174_v51 = vadd.f32 %v5173_v0, %v5172_v6  ;;  %vm4078_vm5 = vcmask 60416   ;;  %v5177_v12 = vsel %vm4000_vm0, %v2834_v60, 0.0  ;;  %v2943_v60 = vld [vmem:[#allocation5 + $0x490] sm:$0xff] }
  0xad   :  { %v4514_v39 = vadd.f32 %v4513_v36, %v4512_v3  ;;  %v3501_v50 = vcombine.high %v2938_v8, %v2938_v8  ;;  %v4788_v54 = vsel %vm3118_vm4, %v3399_v55, 0.0  ;;  %v5179_v11 = vsel %vm4000_vm0, %v3397_v59, 0.0 }
  0xae   :  { %v5176_v24 = vadd.f32 %v5175_v21, %v5174_v51  ;;  %v5181_v53 = vsel %vm4000_vm0, %v2835_v38, 0.0  ;;  %v5183_v56 = vsel %vm4000_vm0, %v3398_v17, 0.0  ;;  %v4569_v32 = vsel %vm4000_vm0, %v2937_v28, 0.0  ;;  %v2945_v28 = vld [vmem:[#allocation5 + $0x4a0] sm:$0xff] }
  0xaf   :  { %v4516_v40 = vadd.f32 %v4515_v42, %v4514_v39  ;;  %v4570_v36 = vsel %vm4000_vm0, %v3500_v45, 0.0  ;;  %v5567_v20 = vadd.f32 %v5566_v46, %v5565_v26  ;;  %v4572_v15 = vsel %vm4000_vm0, %v2938_v8, 0.0  ;;  %v2948_v8 = vld [vmem:[#allocation5 + $0x4b8] sm:$0xff]  ;;  %v2949_v39 = vld [vmem:[#allocation5 + $0x4c0] sm:$0xff] }
  0xb0   :  { %v5178_v63 = vadd.f32 %v5177_v12, %v5176_v24  ;;  %v4571_v31 = vadd.f32 %v4570_v36, %v4569_v32  ;;  %v5185_v62 = vsel %vm4000_vm0, %v2836_v37, 0.0  ;;  %v3502_v42 = vcombine.high %v2939_v61, %v2939_v61  ;;  %v7124_v12 = vld [vmem:[#allocation5 + $0x4c8] sm:$0xff] }
  0xb1   :  { %v4518_v29 = vadd.f32 %v4517_v4, %v4516_v40  ;;  %v4574_v7 = vsel %vm4000_vm0, %v3501_v50, 0.0  ;;  %v5187_v18 = vsel %vm4078_vm5, %v4788_v54, 0.0  ;;  %v3503_v22 = vcombine.high %v2940_v25, %v2940_v25 }
  0xb2   :  { %v5180_v57 = vadd.f32 %v5179_v11, %v5178_v63  ;;  %v4573_v16 = vadd.f32 %v4572_v15, %v4571_v31  ;;  %v3504_v35 = vcombine.high %v2941_v30, %v2941_v30  ;;  %v3509_v4 = vcombine.high %v7109_v48, %v7109_v48  ;;  %v2852_v63 = vld [vmem:[#allocation5 + $0x1b8] sm:$0xff] }
  0xb3   :  { %v4520_v38 = vadd.f32 %v7071_v58, %v4518_v29  ;;  %v4576_v37 = vsel %vm4000_vm0, %v2939_v61, 0.0  ;;  %v7119_v47 = vadd.f32 %v5568_v44, %v5567_v20  ;;  %v3505_v59 = vcombine.high %v2942_v41, %v2942_v41  ;;  %v2851_v61 = vld [vmem:[#allocation5 + $0x1b0] sm:$0xff] }
  0xb4   :  { %v5182_v0 = vadd.f32 %v5181_v53, %v5180_v57  ;;  %v4575_v55 = vadd.f32 %v4574_v7, %v4573_v16  ;;  %v3506_v3 = vcombine.high %v2943_v60, %v2943_v60  ;;  %v3510_v17 = vcombine.high %v2947_v49, %v2947_v49 }
  0xb5   :  { %v4522_v6 = vadd.f32 %v7079_v52, %v4520_v38  ;;  %v4578_v58 = vsel %vm4000_vm0, %v3502_v42, 0.0  ;;  %v3507_v45 = vcombine.high %v2944_v14, %v2944_v14  ;;  %v3508_v26 = vcombine.high %v2945_v28, %v2945_v28  ;;  %v2853_v38 = vld [vmem:[#allocation5 + $0x1c0] sm:$0xff] }
  0xb6   :  { %v5184_v21 = vadd.f32 %v5183_v56, %v5182_v0  ;;  %v4577_v46 = vadd.f32 %v4576_v37, %v4575_v55  ;;  %v4580_v44 = vsel %vm4000_vm0, %v2940_v25, 0.0  ;;  %v5008_v50 = vsel %vm6622_vm3, %v3509_v4, 0.0 }
  0xb7   :  { %v4524_v51 = vadd.f32 %v7083_v19, %v4522_v6  ;;  %v5635_v52 = vsel %vm4000_vm0, %v2947_v49, 0.0  ;;  %v3511_v24 = vcombine.high %v2948_v8, %v2948_v8  ;;  %v5633_v53 = vsel %vm4000_vm0, %v5008_v50, 0.0 }
  0xb8   :  { %v5186_v54 = vadd.f32 %v5185_v62, %v5184_v21  ;;  %v4579_v11 = vadd.f32 %v4578_v58, %v4577_v46  ;;  %v4582_v19 = vsel %vm4000_vm0, %v3503_v22, 0.0  ;;  %v5636_v56 = vadd.f32 %v5635_v52, %v5633_v53  ;;  %v2854_v58 = vld [vmem:[#allocation5 + $0x1c8] sm:$0xff]  ;;  %v2855_v52 = vld [vmem:[#allocation5 + $0x1d0] sm:$0xff] }
  0xb9   :  { %v4526_v40 = vadd.f32 %v7086_v23, %v4524_v51  ;;  %v5637_v32 = vsel %vm4000_vm0, %v3510_v17, 0.0  ;;  %v3512_v25 = vcombine.high %v2949_v39, %v2949_v39  ;;  %v3513_v33 = vcombine.high %v7124_v12, %v7124_v12  ;;  %v2811_v17 = vld [vmem:[#allocation5 + $0x70] sm:$0xff] }
  0xba   :  { %v5188_v36 = vadd.f32 %v5187_v18, %v5186_v54  ;;  %v4581_v20 = vadd.f32 %v4580_v44, %v4579_v11  ;;  %v3979_v31 = vsel %vm3058_vm1, %v3509_v4, 0.0  ;;  %v4584_v15 = vsel %vm4000_vm0, %v2941_v30, 0.0  ;;  %v2812_v44 = vld [vmem:[#allocation5 + $0x78] sm:$0xff] }
  0xbb   :  { %4567 = vadd.xlane.f32.xlu0 %v4526_v40  ;;  %v4586_v23 = vsel %vm4000_vm0, %v3504_v35, 0.0  ;;  %v3414_v29 = vcombine.high %v2851_v61, %v2851_v61  ;;  %v4588_v42 = vsel %vm4000_vm0, %v2942_v41, 0.0  ;;  %v4590_v7 = vsel %vm4000_vm0, %v3505_v59, 0.0 }
  0xbc   :  { %5189 = vadd.xlane.f32.xlu1 %v5188_v36  ;;  %v4583_v62 = vadd.f32 %v4582_v19, %v4581_v20  ;;  %v5638_v57 = vadd.f32 %v5637_v32, %v5636_v56  ;;  %v4592_v18 = vsel %vm4000_vm0, %v2943_v60, 0.0  ;;  %v5639_v49 = vsel %vm4000_vm0, %v2948_v8, 0.0  ;;  %v2856_v8 = vld [vmem:[#allocation5 + $0x1d8] sm:$0xff] }
  0xbd   :  { %v3415_v22 = vcombine.high %v2852_v63, %v2852_v63  ;;  %v5246_v9 = vsel %vm4000_vm0, %v2851_v61, 0.0  ;;  %v4594_v30 = vsel %vm4000_vm0, %v3506_v3, 0.0  ;;  %v5248_v4 = vsel %vm4000_vm0, %v3414_v29, 0.0 }
  0xbe   :  { %v4585_v16 = vadd.f32 %v4584_v15, %v4583_v62  ;;  %v5247_v35 = vadd.f32 %v5246_v9, %v6775_v13  ;;  %v4596_v41 = vsel %vm4000_vm0, %v2944_v14, 0.0  ;;  %v4598_v37 = vsel %vm4000_vm0, %v3507_v45, 0.0  ;;  %v2814_v9 = vld [vmem:[#allocation5 + $0x88] sm:$0xff] }
  0xbf   :  { %v7151_v0 = vsel %vm4000_vm0, %v2945_v28, 0.0  ;;  %v5250_v60 = vsel %vm4000_vm0, %v2852_v63, 0.0  ;;  %v7155_v55 = vsel %vm4000_vm0, %v3508_v26, 0.0  ;;  %v5640_v6 = vadd.f32 %v5639_v49, %v5638_v57  ;;  %v2871_v49 = vld [vmem:[#allocation5 + $0x250] sm:$0xff] }
  0xc0   :  { %v4587_v59 = vadd.f32 %v4586_v23, %v4585_v16  ;;  %v5249_v3 = vadd.f32 %v5248_v4, %v5247_v35  ;;  %v7159_v13 = vsel %vm4000_vm0, %v7109_v48, 0.0  ;;  %v5641_v14 = vsel %vm4000_vm0, %v3511_v24, 0.0 }
  0xc1   :  { %v3416_v21 = vcombine.high %v2853_v38, %v2853_v38  ;;  %v5252_v28 = vsel %vm4000_vm0, %v3415_v22, 0.0  ;;  %v7164_v46 = vsel %vm4000_vm0, %v3979_v31, 0.0  ;;  %v5643_v26 = vsel %vm4000_vm0, %v2949_v39, 0.0 }
  0xc2   :  { %v4589_v45 = vadd.f32 %v4588_v42, %v4587_v59  ;;  %v5251_v51 = vadd.f32 %v5250_v60, %v5249_v3  ;;  %v5645_v50 = vsel %vm4000_vm0, %v3512_v25, 0.0  ;;  %v3419_v54 = vcombine.high %v2856_v8, %v2856_v8  ;;  %v2813_v25 = vld [vmem:[#allocation5 + $0x80] sm:$0xff] }
  0xc3   :  { %v5254_v48 = vsel %vm4000_vm0, %v2853_v38, 0.0  ;;  %v3374_v11 = vcombine.high %v2811_v17, %v2811_v17  ;;  %v5642_v53 = vadd.f32 %v5641_v14, %v5640_v6  ;;  %v3417_v61 = vcombine.high %v2854_v58, %v2854_v58  ;;  %v2872_v6 = vld [vmem:[#allocation5 + $0x258] sm:$0xff] }
  0xc4   :  { %v4591_v24 = vadd.f32 %v4590_v7, %v4589_v45  ;;  %v5253_v40 = vadd.f32 %v5252_v28, %v5251_v51  ;;  %v5256_v19 = vsel %vm4000_vm0, %v3416_v21, 0.0  ;;  %v3375_v56 = vcombine.high %v2812_v44, %v2812_v44  ;;  %v2816_v28 = vld [vmem:[#allocation5 + $0x98] sm:$0xff] }
  0xc5   :  { %v5084_v32 = vsel %vm4000_vm0, %v2811_v17, 0.0  ;;  %v5086_v39 = vsel %vm4000_vm0, %v3374_v11, 0.0  ;;  %v3418_v20 = vcombine.high %v2855_v52, %v2855_v52  ;;  %v7175_v15 = vsel %vm4000_vm0, %v7124_v12, 0.0  ;;  %v2896_v12 = vld [vmem:[#allocation5 + $0x318] sm:$0xff] }
  0xc6   :  { %v4593_v36 = vadd.f32 %v4592_v18, %v4591_v24  ;;  %v5255_v63 = vadd.f32 %v5254_v48, %v5253_v40  ;;  %v5085_v31 = vadd.f32 %v5084_v32, %v6720_v43  ;;  %v4828_v23 = vsel %vm3118_vm4, %v3419_v54, 0.0  ;;  %v2815_v48 = vld [vmem:[#allocation5 + $0x90] sm:$0xff]  ;;  %v2873_v24 = vld [vmem:[#allocation5 + $0x260] sm:$0xff] }
  0xc7   :  { %v5258_v29 = vsel %vm4000_vm0, %v2854_v58, 0.0  ;;  %v5088_v62 = vsel %vm4000_vm0, %v2812_v44, 0.0  ;;  %v5644_v7 = vadd.f32 %v5643_v26, %v5642_v53  ;;  %v5260_v22 = vsel %vm4000_vm0, %v3417_v61, 0.0 }
  0xc8   :  { %v4595_v42 = vadd.f32 %v4594_v30, %v4593_v36  ;;  %v5257_v57 = vadd.f32 %v5256_v19, %v5255_v63  ;;  %v5087_v18 = vadd.f32 %v5086_v39, %v5085_v31  ;;  %v5262_v43 = vsel %vm4000_vm0, %v2855_v52, 0.0 }
  0xc9   :  { %v3376_v16 = vcombine.high %v2813_v25, %v2813_v25  ;;  %v5090_v38 = vsel %vm4000_vm0, %v3375_v56, 0.0  ;;  %v5264_v60 = vsel %vm4000_vm0, %v3418_v20, 0.0  ;;  %v5266_v30 = vsel %vm4000_vm0, %v2856_v8, 0.0  ;;  %v2891_v20 = vld [vmem:[#allocation5 + $0x2f0] sm:$0xff] }
  0xca   :  { %v4597_v35 = vadd.f32 %v4596_v41, %v4595_v42  ;;  %v5259_v4 = vadd.f32 %v5258_v29, %v5257_v57  ;;  %v5089_v59 = vadd.f32 %v5088_v62, %v5087_v18  ;;  %v5268_v3 = vsel %vm4078_vm5, %v4828_v23, 0.0  ;;  %v2874_v29 = vld [vmem:[#allocation5 + $0x268] sm:$0xff]  ;;  %v2892_v57 = vld [vmem:[#allocation5 + $0x2f8] sm:$0xff] }
  0xcb   :  { %v5092_v17 = vsel %vm4000_vm0, %v2813_v25, 0.0  ;;  %v3434_v14 = vcombine.high %v2871_v49, %v2871_v49  ;;  %v3377_v45 = vcombine.high %v2814_v9, %v2814_v9  ;;  %v5094_v51 = vsel %vm4000_vm0, %v3376_v16, 0.0 }
  0xcc   :  { %v4599_v58 = vadd.f32 %v4598_v37, %v4597_v35  ;;  %v5261_v21 = vadd.f32 %v5260_v22, %v5259_v4  ;;  %v5091_v26 = vadd.f32 %v5090_v38, %v5089_v59  ;;  %v3435_v41 = vcombine.high %v2872_v6, %v2872_v6  ;;  %v2876_v38 = vld [vmem:[#allocation5 + $0x278] sm:$0xff]  ;;  %v2875_v59 = vld [vmem:[#allocation5 + $0x270] sm:$0xff] }
  0xcd   :  { %v5327_v44 = vsel %vm4000_vm0, %v2871_v49, 0.0  ;;  %v5329_v52 = vsel %vm4000_vm0, %v3434_v14, 0.0  ;;  %v5646_v37 = vadd.f32 %v5645_v50, %v5644_v7  ;;  %v3379_v61 = vcombine.high %v2816_v28, %v2816_v28 }
  0xce   :  { %v4601_v54 = vadd.f32 %v7151_v0, %v4599_v58  ;;  %v5263_v8 = vadd.f32 %v5262_v43, %v5261_v21  ;;  %v5093_v11 = vadd.f32 %v5092_v17, %v5091_v26  ;;  %v5328_v53 = vadd.f32 %v5327_v44, %v6911_v10 }
  0xcf   :  { %v5096_v40 = vsel %vm4000_vm0, %v2814_v9, 0.0  ;;  %v5331_v19 = vsel %vm4000_vm0, %v2872_v6, 0.0  ;;  %v3378_v63 = vcombine.high %v2815_v48, %v2815_v48  ;;  %v5098_v0 = vsel %vm4000_vm0, %v3377_v45, 0.0 }
  0xd0   :  { %v4603_v56 = vadd.f32 %v7155_v55, %v4601_v54  ;;  %v5265_v32 = vadd.f32 %v5264_v60, %v5263_v8  ;;  %v5095_v39 = vadd.f32 %v5094_v51, %v5093_v11  ;;  %v5330_v36 = vadd.f32 %v5329_v52, %v5328_v53 }
  0xd1   :  { %v3436_v25 = vcombine.high %v2873_v24, %v2873_v24  ;;  %v5333_v31 = vsel %vm4000_vm0, %v3435_v41, 0.0  ;;  %v4748_v42 = vsel %vm3118_vm4, %v3379_v61, 0.0  ;;  %v5100_v55 = vsel %vm4000_vm0, %v2815_v48, 0.0  ;;  %v2911_v41 = vld [vmem:[#allocation5 + $0x390] sm:$0xff] }
  0xd2   :  { %v4605_v10 = vadd.f32 %v7159_v13, %v4603_v56  ;;  %v5267_v50 = vadd.f32 %v5266_v30, %v5265_v32  ;;  %v5097_v23 = vadd.f32 %v5096_v40, %v5095_v39  ;;  %v5332_v62 = vadd.f32 %v5331_v19, %v5330_v36  ;;  %v2893_v30 = vld [vmem:[#allocation5 + $0x300] sm:$0xff]  ;;  %v2912_v56 = vld [vmem:[#allocation5 + $0x398] sm:$0xff] }
  0xd3   :  { %v5335_v7 = vsel %vm4000_vm0, %v2873_v24, 0.0  ;;  %v3454_v18 = vcombine.high %v2891_v20, %v2891_v20  ;;  %v5102_v13 = vsel %vm4000_vm0, %v3378_v63, 0.0  ;;  %v5104_v16 = vsel %vm4000_vm0, %v2816_v28, 0.0  ;;  %v2894_v24 = vld [vmem:[#allocation5 + $0x308] sm:$0xff] }
  0xd4   :  { %v4607_v49 = vadd.f32 %v7164_v46, %v4605_v10  ;;  %v5269_v22 = vadd.f32 %v5268_v3, %v5267_v50  ;;  %v5099_v43 = vadd.f32 %v5098_v0, %v5097_v23  ;;  %v5334_v9 = vadd.f32 %v5333_v31, %v5332_v62  ;;  %v2895_v0 = vld [vmem:[#allocation5 + $0x310] sm:$0xff] }
  0xd5   :  { %v3437_v35 = vcombine.high %v2874_v29, %v2874_v29  ;;  %v5337_v4 = vsel %vm4000_vm0, %v3436_v25, 0.0  ;;  %v3455_v17 = vcombine.high %v2892_v57, %v2892_v57  ;;  %v5408_v46 = vsel %vm4000_vm0, %v2891_v20, 0.0 }
  0xd6   :  { %4648 = vadd.xlane.f32.xlu0 %v4607_v49  ;;  %5270 = vadd.xlane.f32.xlu1 %v5269_v22  ;;  %v5101_v60 = vadd.f32 %v5100_v55, %v5099_v43  ;;  %v5336_v6 = vadd.f32 %v5335_v7, %v5334_v9  ;;  %v5106_v3 = vsel %vm4078_vm5, %v4748_v42, 0.0  ;;  %v5339_v14 = vsel %vm4000_vm0, %v2874_v29, 0.0  ;;  %v2913_v55 = vld [vmem:[#allocation5 + $0x3a0] sm:$0xff]  ;;  %v2931_v43 = vld [vmem:[#allocation5 + $0x430] sm:$0xff] }
  0xd7   :  { %v5409_v58 = vadd.f32 %v5408_v46, %v6979_v27  ;;  %v5410_v21 = vsel %vm4000_vm0, %v3454_v18, 0.0  ;;  %v3439_v45 = vcombine.high %v2876_v38, %v2876_v38  ;;  %v5412_v51 = vsel %vm4000_vm0, %v2892_v57, 0.0 }
  0xd8   :  { %v5103_v28 = vadd.f32 %v5102_v13, %v5101_v60  ;;  %v5338_v26 = vadd.f32 %v5337_v4, %v5336_v6  ;;  %v3438_v44 = vcombine.high %v2875_v59, %v2875_v59  ;;  %v5341_v52 = vsel %vm4000_vm0, %v3437_v35, 0.0 }
  0xd9   :  { %v3456_v54 = vcombine.high %v2893_v30, %v2893_v30  ;;  %v5411_v8 = vadd.f32 %v5410_v21, %v5409_v58  ;;  %v5649_v48 = vsel %vm4000_vm0, %v3513_v33, 0.0  ;;  %v5414_v53 = vsel %vm4000_vm0, %v3455_v17, 0.0  ;;  %v2914_v17 = vld [vmem:[#allocation5 + $0x3a8] sm:$0xff] }
  0xda   :  { %v5105_v11 = vadd.f32 %v5104_v16, %v5103_v28  ;;  %v5340_v27 = vadd.f32 %v5339_v14, %v5338_v26  ;;  %v5648_v61 = vadd.f32 %v7175_v15, %v5646_v37  ;;  %v5343_v40 = vsel %vm4000_vm0, %v2875_v59, 0.0 }
  0xdb   :  { %v5413_v19 = vadd.f32 %v5412_v51, %v5411_v8  ;;  %v3474_v32 = vcombine.high %v2911_v41, %v2911_v41  ;;  %v4868_v36 = vsel %vm3118_vm4, %v3439_v45, 0.0  ;;  %v5416_v33 = vsel %vm4000_vm0, %v2893_v30, 0.0  ;;  %v2933_v51 = vld [vmem:[#allocation5 + $0x440] sm:$0xff] }
  0xdc   :  { %v5107_v39 = vadd.f32 %v5106_v3, %v5105_v11  ;;  %v5342_v20 = vadd.f32 %v5341_v52, %v5340_v27  ;;  %v5345_v63 = vsel %vm4000_vm0, %v3438_v44, 0.0  ;;  %v3457_v25 = vcombine.high %v2894_v24, %v2894_v24  ;;  %v2915_v52 = vld [vmem:[#allocation5 + $0x3b0] sm:$0xff] }
  0xdd   :  { %v5415_v31 = vadd.f32 %v5414_v53, %v5413_v19  ;;  %v5418_v15 = vsel %vm4000_vm0, %v3456_v54, 0.0  ;;  %v3475_v10 = vcombine.high %v2912_v56, %v2912_v56  ;;  %v5489_v50 = vsel %vm4000_vm0, %v2911_v41, 0.0  ;;  %v2916_v53 = vld [vmem:[#allocation5 + $0x3b8] sm:$0xff]  ;;  %v2951_v19 = vld [vmem:[#allocation5 + $0x4d0] sm:$0xff] }
  0xde   :  { %5108 = vadd.xlane.f32.xlu0 %v5107_v39  ;;  %v5344_v37 = vadd.f32 %v5343_v40, %v5342_v20  ;;  %v5491_v23 = vsel %vm4000_vm0, %v3474_v32, 0.0  ;;  %v5347_v29 = vsel %vm4000_vm0, %v2876_v38, 0.0  ;;  %v3459_v62 = vcombine.high %v2896_v12, %v2896_v12 }
  0xdf   :  { %v5417_v42 = vadd.f32 %v5416_v33, %v5415_v31  ;;  %v5490_v7 = vadd.f32 %v5489_v50, %v7054_v5  ;;  %v3458_v18 = vcombine.high %v2895_v0, %v2895_v0  ;;  %v5420_v49 = vsel %vm4000_vm0, %v2894_v24, 0.0  ;;  %v2932_v5 = vld [vmem:[#allocation5 + $0x438] sm:$0xff] }
  0xe0   :  { %v5346_v57 = vadd.f32 %v5345_v63, %v5344_v37  ;;  %v5493_v22 = vsel %vm4000_vm0, %v2912_v56, 0.0  ;;  %v7232_v9 = vadd.f32 %v5649_v48, %v5648_v61  ;;  %v5349_v13 = vsel %vm4078_vm5, %v4868_v36, 0.0 }
  0xe1   :  { %v5419_v16 = vadd.f32 %v5418_v15, %v5417_v42  ;;  %v5492_v35 = vadd.f32 %v5491_v23, %v5490_v7  ;;  %v5422_v38 = vsel %vm4000_vm0, %v3457_v25, 0.0  ;;  %v3476_v60 = vcombine.high %v2913_v55, %v2913_v55  ;;  %v2952_v25 = vld [vmem:[#allocation5 + $0x4d8] sm:$0xff] }
  0xe2   :  { %v5348_v4 = vadd.f32 %v5347_v29, %v5346_v57  ;;  %v5495_v59 = vsel %vm4000_vm0, %v3475_v10, 0.0  ;;  %v4908_v6 = vsel %vm3118_vm4, %v3459_v62, 0.0  ;;  %v3494_v3 = vcombine.high %v2931_v43, %v2931_v43 }
  0xe3   :  { %v5421_v30 = vadd.f32 %v5420_v49, %v5419_v16  ;;  %v5494_v46 = vadd.f32 %v5493_v22, %v5492_v35  ;;  %v5424_v58 = vsel %vm4000_vm0, %v2895_v0, 0.0  ;;  %v5426_v21 = vsel %vm4000_vm0, %v3458_v18, 0.0  ;;  %v2935_v49 = vld [vmem:[#allocation5 + $0x450] sm:$0xff]  ;;  %v2953_v35 = vld [vmem:[#allocation5 + $0x4e0] sm:$0xff] }
  0xe4   :  { %v5350_v14 = vadd.f32 %v5349_v13, %v5348_v4  ;;  %v5497_v28 = vsel %vm4000_vm0, %v2913_v55, 0.0  ;;  %v3495_v41 = vcombine.high %v2932_v5, %v2932_v5  ;;  %v5570_v44 = vsel %vm4000_vm0, %v2931_v43, 0.0 }
  0xe5   :  { %v5423_v45 = vadd.f32 %v5422_v38, %v5421_v30  ;;  %v5496_v26 = vadd.f32 %v5495_v59, %v5494_v46  ;;  %v3477_v54 = vcombine.high %v2914_v17, %v2914_v17  ;;  %v5499_v8 = vsel %vm4000_vm0, %v3476_v60, 0.0  ;;  %v2936_v59 = vld [vmem:[#allocation5 + $0x458] sm:$0xff] }
  0xe6   :  { %5351 = vadd.xlane.f32.xlu1 %v5350_v14  ;;  %v5571_v48 = vadd.f32 %v5570_v44, %v7119_v47  ;;  %v5572_v11 = vsel %vm4000_vm0, %v3494_v3, 0.0  ;;  %v5428_v24 = vsel %vm4000_vm0, %v2896_v12, 0.0  ;;  %v5574_v40 = vsel %vm4000_vm0, %v2932_v5, 0.0  ;;  %v2934_v47 = vld [vmem:[#allocation5 + $0x448] sm:$0xff] }
  0xe7   :  { %v5425_v27 = vadd.f32 %v5424_v58, %v5423_v45  ;;  %v5498_v61 = vadd.f32 %v5497_v28, %v5496_v26  ;;  %v5430_v56 = vsel %vm4078_vm5, %v4908_v6, 0.0  ;;  %v5501_v32 = vsel %vm4000_vm0, %v2914_v17, 0.0 }
  0xe8   :  { %v3496_v39 = vcombine.high %v2933_v51, %v2933_v51  ;;  %v5573_v36 = vadd.f32 %v5572_v11, %v5571_v48  ;;  %v3478_v33 = vcombine.high %v2915_v52, %v2915_v52  ;;  %v5576_v0 = vsel %vm4000_vm0, %v3495_v41, 0.0 }
  0xe9   :  { %v5427_v20 = vadd.f32 %v5426_v21, %v5425_v27  ;;  %v5500_v63 = vadd.f32 %v5499_v8, %v5498_v61  ;;  %v3479_v31 = vcombine.high %v2916_v53, %v2916_v53  ;;  %v5503_v12 = vsel %vm4000_vm0, %v3477_v54, 0.0 }
  0xea   :  { %v5575_v15 = vadd.f32 %v5574_v40, %v5573_v36  ;;  %v3514_v37 = vcombine.high %v2951_v19, %v2951_v19  ;;  %v5505_v23 = vsel %vm4000_vm0, %v2915_v52, 0.0  ;;  %v5578_v29 = vsel %vm4000_vm0, %v2933_v51, 0.0  ;;  %v2954_v51 = vld [vmem:[#allocation5 + $0x4e8] sm:$0xff] }
  0xeb   :  { %v5429_v10 = vadd.f32 %v5428_v24, %v5427_v20  ;;  %v5502_v50 = vadd.f32 %v5501_v32, %v5500_v63  ;;  %v3497_v62 = vcombine.high %v2934_v47, %v2934_v47  ;;  %v5580_v55 = vsel %vm4000_vm0, %v3496_v39, 0.0  ;;  %v2956_v39 = vld [vmem:[#allocation5 + $0x4f8] sm:$0xff] }
  0xec   :  { %v5577_v42 = vadd.f32 %v5576_v0, %v5575_v15  ;;  %v3515_v7 = vcombine.high %v2952_v25, %v2952_v25  ;;  %v5651_v22 = vsel %vm4000_vm0, %v2951_v19, 0.0  ;;  %v5653_v43 = vsel %vm4000_vm0, %v3514_v37, 0.0  ;;  %v2955_v19 = vld [vmem:[#allocation5 + $0x4f0] sm:$0xff] }
  0xed   :  { %v5431_v57 = vadd.f32 %v5430_v56, %v5429_v10  ;;  %v5504_v18 = vadd.f32 %v5503_v12, %v5502_v50  ;;  %v5507_v13 = vsel %vm4000_vm0, %v3478_v33, 0.0  ;;  %v5652_v4 = vadd.f32 %v5651_v22, %v7232_v9  ;;  %v5873_v22 = vld [vmem:[#allocation7 + $0xf8] sm:$0xff] }
  0xee   :  { %v5579_v16 = vadd.f32 %v5578_v29, %v5577_v42  ;;  %v4948_v38 = vsel %vm3118_vm4, %v3479_v31, 0.0  ;;  %v5582_v5 = vsel %vm4000_vm0, %v2934_v47, 0.0  ;;  %v5655_v6 = vsel %vm4000_vm0, %v2952_v25, 0.0 }
  0xef   :  { %5432 = vadd.xlane.f32.xlu0 %v5431_v57  ;;  %v5506_v60 = vadd.f32 %v5505_v23, %v5504_v18  ;;  %v5509_v30 = vsel %vm4000_vm0, %v2916_v53, 0.0  ;;  %v3498_v17 = vcombine.high %v2935_v49, %v2935_v49  ;;  %v5654_v3 = vadd.f32 %v5653_v43, %v5652_v4  ;;  %v5937_v43 = vld [vmem:[#allocation9 + $0xf8] sm:$0xff] }
  0xf0   :  { %v5581_v46 = vadd.f32 %v5580_v55, %v5579_v16  ;;  %v5584_v58 = vsel %vm4000_vm0, %v3497_v62, 0.0  ;;  %v3516_v21 = vcombine.high %v2953_v35, %v2953_v35  ;;  %v5657_v9 = vsel %vm4000_vm0, %v3515_v7, 0.0  ;;  %5970 = vmatprep.subr.mxu1 %v5937_v43  ;;  %v5935_v16 = vld [vmem:[#allocation9 + $0xe8] sm:$0xff]  ;;  %v5933_v4 = vld [vmem:[#allocation9 + $0xd8] sm:$0xff] }
  0xf1   :  { %v5508_v14 = vadd.f32 %v5507_v13, %v5506_v60  ;;  %v5511_v28 = vsel %vm4078_vm5, %v4948_v38, 0.0  ;;  %v3499_v45 = vcombine.high %v2936_v59, %v2936_v59  ;;  %v5656_v41 = vadd.f32 %v5655_v6, %v5654_v3  ;;  %v5936_v13 = vld [vmem:[#allocation9 + $0xf0] sm:$0xff]  ;;  %v5931_v60 = vld [vmem:[#allocation9 + $0xc8] sm:$0xff]  ;;  %v5869_v43 = vld [vmem:[#allocation7 + $0xd8] sm:$0xff] }
  0xf2   :  { %v5583_v26 = vadd.f32 %v5582_v5, %v5581_v46  ;;  %v5586_v52 = vsel %vm4000_vm0, %v2935_v49, 0.0  ;;  %v5659_v54 = vsel %vm4000_vm0, %v2953_v35, 0.0  ;;  %v5588_v27 = vsel %vm4000_vm0, %v3498_v17, 0.0  ;;  %5971 = vmatpush1.msra.mxu1 %v5936_v13  ;;  %v5934_v35 = vld [vmem:[#allocation9 + $0xe0] sm:$0xff]  ;;  %v5932_v38 = vld [vmem:[#allocation9 + $0xd0] sm:$0xff]  ;;  %v5929_v5 = vld [vmem:[#allocation9 + $0xb8] sm:$0xff] }
  0xf3   :  { %v5510_v44 = vadd.f32 %v5509_v30, %v5508_v14  ;;  %v5658_v48 = vadd.f32 %v5657_v9, %v5656_v41  ;;  %v3517_v24 = vcombine.high %v2954_v51, %v2954_v51  ;;  %v5661_v53 = vsel %vm4000_vm0, %v3516_v21, 0.0  ;;  %5972 = vmatprep.subr.mxu1 %v5935_v16  ;;  %v5928_v6 = vld [vmem:[#allocation9 + $0xb0] sm:$0xff]  ;;  %v5927_v30 = vld [vmem:[#allocation9 + $0xa8] sm:$0xff]  ;;  %v5926_v17 = vld [vmem:[#allocation9 + $0xa0] sm:$0xff] }
  0xf4   :  { %v5585_v8 = vadd.f32 %v5584_v58, %v5583_v26  ;;  %v4988_v61 = vsel %vm3118_vm4, %v3499_v45, 0.0  ;;  %v5590_v32 = vsel %vm4000_vm0, %v2936_v59, 0.0  ;;  %v5663_v36 = vsel %vm4000_vm0, %v2954_v51, 0.0  ;;  %5973 = vmatpush1.msra.mxu1 %v5934_v35  ;;  %v5930_v59 = vld [vmem:[#allocation9 + $0xc0] sm:$0xff]  ;;  %v5925_v46 = vld [vmem:[#allocation9 + $0x98] sm:$0xff]  ;;  %v5924_v3 = vld [vmem:[#allocation9 + $0x90] sm:$0xff] }
  0xf5   :  { %v5512_v11 = vadd.f32 %v5511_v28, %v5510_v44  ;;  %v5660_v56 = vadd.f32 %v5659_v54, %v5658_v48  ;;  %v5592_v63 = vsel %vm4078_vm5, %v4988_v61, 0.0  ;;  %v3518_v47 = vcombine.high %v2955_v19, %v2955_v19  ;;  %5974 = vmatprep.subr.mxu1 %v5933_v4  ;;  %v5923_v14 = vld [vmem:[#allocation9 + $0x88] sm:$0xff]  ;;  %v5922_v58 = vld [vmem:[#allocation9 + $0x80] sm:$0xff]  ;;  %v5921_v21 = vld [vmem:[#allocation9 + $0x78] sm:$0xff] }
  0xf6   :  { %v5587_v40 = vadd.f32 %v5586_v52, %v5585_v8  ;;  %v5665_v0 = vsel %vm4000_vm0, %v3517_v24, 0.0  ;;  %v3519_v31 = vcombine.high %v2956_v39, %v2956_v39  ;;  %v5667_v15 = vsel %vm4000_vm0, %v2955_v19, 0.0  ;;  %5975 = vmatpush1.msra.mxu1 %v5932_v38  ;;  %v5920_v9 = vld [vmem:[#allocation9 + $0x70] sm:$0xff]  ;;  %v5919_v28 = vld [vmem:[#allocation9 + $0x68] sm:$0xff]  ;;  %v5918_v45 = vld [vmem:[#allocation9 + $0x60] sm:$0xff] }
  0xf7   :  { %5513 = vadd.xlane.f32.xlu1 %v5512_v11  ;;  %v5662_v33 = vadd.f32 %v5661_v53, %v5660_v56  ;;  %v5669_v50 = vsel %vm4000_vm0, %v3518_v47, 0.0  ;;  %vm78_vm6 = vcmask 31744   ;;  %v6546_v62 = vmov 0.0   ;;  %5976 = vmatprep.subr.mxu1 %v5931_v60  ;;  %v5917_v26 = vld [vmem:[#allocation9 + $0x58] sm:$0xff]  ;;  %v5916_v51 = vld [vmem:[#allocation9 + $0x50] sm:$0xff]  ;;  %v5915_v41 = vld [vmem:[#allocation9 + $0x48] sm:$0xff]  ;;  %v4082_v53 = vpop.xlane.xlu0 %4081 }
  0xf8   :  { %v5589_v20 = vadd.f32 %v5588_v27, %v5587_v40  ;;  %v5028_v23 = vsel %vm3118_vm4, %v3519_v31, 0.0  ;;  %79 = vst.msk [vmem:[#allocation2] sm:$0xff] %vm78_vm6, %v6546_v62  ;;  %80 = vst.msk [vmem:[#allocation3] sm:$0xff] %vm78_vm6, %v6546_v62  ;;  %5825 = vmatprep.mubr.f32.mxu0 %v6546_v62  ;;  %v5671_v42 = vsel %vm4000_vm0, %v2956_v39, 0.0  ;;  %v5748_v49 = vcombine.high %v5734_v34, %v5734_v34  ;;  %v5914_v44 = vld [vmem:[#allocation9 + $0x40] sm:$0xff]  ;;  %v5913_v52 = vld [vmem:[#allocation9 + $0x38] sm:$0xff]  ;;  %v4244_v40 = vpop.xlane.xlu1 %4243 }
  0xf9   :  { %v5664_v12 = vadd.f32 %v5663_v36, %v5662_v33  ;;  %v5673_v7 = vsel %vm4078_vm5, %v5028_v23, 0.0  ;;  %5977 = vmatpush1.msra.mxu1 %v5930_v59  ;;  %v5912_v54 = vld [vmem:[#allocation9 + $0x30] sm:$0xff]  ;;  %v5911_v8 = vld [vmem:[#allocation9 + $0x28] sm:$0xff]  ;;  %v5910_v48 = vld [vmem:[#allocation9 + $0x20] sm:$0xff]  ;;  %v7294_v61 = vshrl.u32 %v2957_v1, 7  ;;  %vm4690_vm7 = vcmask 1041409  }
  0xfa   :  { %v5591_v25 = vadd.f32 %v5590_v32, %v5589_v20  ;;  %6251 = vmatprep.subr.msk.mxu0 %vm4000_vm0, %v5748_v49  ;;  %5978 = vmatprep.subr.mxu1 %v5929_v5  ;;  %v5909_v11 = vld [vmem:[#allocation9 + $0x18] sm:$0xff]  ;;  %v5908_v27 = vld [vmem:[#allocation9 + $0x10] sm:$0xff]  ;;  %v5907_v24 = vld [vmem:[#allocation9 + $0x8] sm:$0xff]  ;;  %vm4692_vm8 = vcmask 1042434   ;;  %vm4694_vm9 = vcmask 1043459   ;;  %vm4696_vm10 = vcmask 1044484  }
  0xfb   :  { %v5666_v10 = vadd.f32 %v5665_v0, %v5664_v12  ;;  %6252 = vmatpush1.msk.msra.mxu0 %vm4000_vm0, %v5734_v34  ;;  %5979 = vmatpush1.msra.mxu1 %v5928_v6  ;;  %v7298_v56 = vsub.s32 %v6605_v2, %v7294_v61  ;;  %vm4698_vm11 = vcmask 1045509   ;;  %vm4700_vm12 = vcmask 1046534   ;;  %v5872_v34 = vld [vmem:[#allocation7 + $0xf0] sm:$0xff]  ;;  %v5871_v49 = vld [vmem:[#allocation7 + $0xe8] sm:$0xff]  ;;  %v5866_v35 = vld [vmem:[#allocation7 + $0xc0] sm:$0xff] }
  0xfc   :  { %v5593_v37 = vadd.f32 %v5592_v63, %v5591_v25  ;;  %6041 = vmatprep.subr.mxu0 %v5873_v22  ;;  %5980 = vmatprep.subr.mxu1 %v5927_v30  ;;  %v4163_v19 = vpop.xlane.xlu0 %4162  ;;  %vm4702_vm13 = vcmask 1047559   ;;  %v5870_v22 = vld [vmem:[#allocation7 + $0xe0] sm:$0xff]  ;;  %v5868_v13 = vld [vmem:[#allocation7 + $0xd0] sm:$0xff]  ;;  %v5867_v16 = vld [vmem:[#allocation7 + $0xc8] sm:$0xff]  ;;  %vm6243_vm14 = vcmask 7168  }
  0xfd   :  { %v5668_v29 = vadd.f32 %v5667_v15, %v5666_v10  ;;  %5981 = vmatpush1.msra.mxu1 %v5926_v17  ;;  %v4665_v32 = vrot.slane %v4163_v19, %v7298_v56  ;;  %v4661_v39 = vrot.slane %v4082_v53, %v7298_v56  ;;  %v4669_v63 = vrot.slane %v4244_v40, %v7298_v56  ;;  %v5865_v4 = vld [vmem:[#allocation7 + $0xb8] sm:$0xff]  ;;  %v5864_v60 = vld [vmem:[#allocation7 + $0xb0] sm:$0xff]  ;;  %v5863_v59 = vld [vmem:[#allocation7 + $0xa8] sm:$0xff] }
  0xfe   :  { %5594 = vadd.xlane.f32.xlu0 %v5593_v37  ;;  %5982 = vmatprep.subr.mxu1 %v5925_v46  ;;  %v5862_v5 = vld [vmem:[#allocation7 + $0xa0] sm:$0xff]  ;;  %v5861_v6 = vld [vmem:[#allocation7 + $0x98] sm:$0xff]  ;;  %v5859_v30 = vld [vmem:[#allocation7 + $0x88] sm:$0xff] }
  0xff   :  { %v5670_v55 = vadd.f32 %v5669_v50, %v5668_v29  ;;  %5983 = vmatpush1.msra.mxu1 %v5924_v3  ;;  %v4691_v33 = vsel %vm4690_vm7, %v4665_v32, %v4661_v39  ;;  %v3199_v29 = vld [vmem:[#allocation2] sm:$0xff]  ;;  %v5858_v3 = vld [vmem:[#allocation7 + $0x80] sm:$0xff] }
 0x100   :  { %5984 = vmatprep.subr.mxu1 %v5923_v14  ;;  %v4693_v47 = vsel %vm4692_vm8, %v4669_v63, %v4691_v33  ;;  %v5857_v14 = vld [vmem:[#allocation7 + $0x78] sm:$0xff]  ;;  %v5848_v53 = vld [vmem:[#allocation7 + $0x30] sm:$0xff]  ;;  %v5847_v40 = vld [vmem:[#allocation7 + $0x28] sm:$0xff] }
 0x101   :  { %v5672_v57 = vadd.f32 %v5671_v42, %v5670_v55  ;;  %5985 = vmatpush1.msra.mxu1 %v5922_v58  ;;  %v5856_v58 = vld [vmem:[#allocation7 + $0x70] sm:$0xff]  ;;  %v5846_v39 = vld [vmem:[#allocation7 + $0x20] sm:$0xff]  ;;  %v5845_v33 = vld [vmem:[#allocation7 + $0x18] sm:$0xff] }
 0x102   :  { %5986 = vmatprep.subr.mxu1 %v5921_v21  ;;  %v5844_v63 = vld [vmem:[#allocation7 + $0x10] sm:$0xff] }
 0x103   :  { %v5674_v18 = vadd.f32 %v5673_v7, %v5672_v57  ;;  %5987 = vmatpush1.msra.mxu1 %v5920_v9  ;;  %v5855_v9 = vld [vmem:[#allocation7 + $0x68] sm:$0xff] }
 0x104   :  { %5988 = vmatprep.subr.mxu1 %v5919_v28  ;;  %v5854_v28 = vld [vmem:[#allocation7 + $0x60] sm:$0xff] }
 0x105   :  { %5675 = vadd.xlane.f32.xlu1 %v5674_v18  ;;  %5989 = vmatpush1.msra.mxu1 %v5918_v45 }
 0x106   :  { %5990 = vmatprep.subr.mxu1 %v5917_v26  ;;  %v5853_v26 = vld [vmem:[#allocation7 + $0x58] sm:$0xff] }
 0x107   :  { %5991 = vmatpush1.msra.mxu1 %v5916_v51 }
 0x108   :  { %5992 = vmatprep.subr.mxu1 %v5915_v41  ;;  %v5852_v41 = vld [vmem:[#allocation7 + $0x50] sm:$0xff] }
 0x109   :  { %5993 = vmatpush1.msra.mxu1 %v5914_v44 }
 0x10a   :  { %5994 = vmatprep.subr.mxu1 %v5913_v52 }
 0x10b   :  { %5995 = vmatpush1.msra.mxu1 %v5912_v54  ;;  %v5851_v54 = vld [vmem:[#allocation7 + $0x48] sm:$0xff] }
 0x10c   :  { %5996 = vmatprep.subr.mxu1 %v5911_v8 }
 0x10d   :  { %5997 = vmatpush1.msra.mxu1 %v5910_v48  ;;  %v5850_v48 = vld [vmem:[#allocation7 + $0x40] sm:$0xff] }
 0x10e   :  { %5998 = vmatprep.subr.mxu1 %v5909_v11  ;;  %v4325_v36 = vpop.xlane.xlu1 %4324 }
 0x10f   :  { %5999 = vmatpush1.msra.mxu1 %v5908_v27  ;;  %v4673_v1 = vrot.slane %v4325_v36, %v7298_v56  ;;  %v5849_v27 = vld [vmem:[#allocation7 + $0x38] sm:$0xff] }
 0x110   :  { %6000 = vmatprep.subr.mxu1 %v5907_v24 }
 0x111   :  { %v4695_v31 = vsel %vm4694_vm9, %v4673_v1, %v4693_v47  ;;  %v5843_v47 = vld [vmem:[#allocation7 + $0x8] sm:$0xff] }
 0x120   :  { %v4406_v20 = vpop.xlane.xlu0 %4405 }
 0x121   :  { %v4677_v2 = vrot.slane %v4406_v20, %v7298_v56 }
 0x123   :  { %v4697_v15 = vsel %vm4696_vm10, %v4677_v2, %v4695_v31  ;;  %v5905_v31 = vld [vmem:[#allocation7 + $0x1f8] sm:$0xff] }
 0x132   :  { %v4487_v0 = vpop.xlane.xlu1 %4486 }
 0x133   :  { %v4681_v12 = vrot.slane %v4487_v0, %v7298_v56 }
 0x135   :  { %v4699_v50 = vsel %vm4698_vm11, %v4681_v12, %v4697_v15  ;;  %v5904_v12 = vld [vmem:[#allocation7 + $0x1f0] sm:$0xff] }
 0x144   :  { %v4568_v25 = vpop.xlane.xlu0 %4567 }
 0x145   :  { %v4685_v37 = vrot.slane %v4568_v25, %v7298_v56  ;;  %v5190_v38 = vpop.xlane.xlu1 %5189  ;;  %v5842_v25 = vld [vmem:[#allocation7] sm:$0xff] }
 0x146   :  { %v5692_v45 = vrot.slane %v5190_v38, %v7298_v56  ;;  %v5893_v38 = vld [vmem:[#allocation7 + $0x198] sm:$0xff] }
 0x147   :  { %v4701_v42 = vsel %vm4700_vm12, %v4685_v37, %v4699_v50  ;;  %v5903_v37 = vld [vmem:[#allocation7 + $0x1e8] sm:$0xff] }
 0x15f   :  { %v4649_v10 = vpop.xlane.xlu0 %4648  ;;  %v5271_v17 = vpop.xlane.xlu1 %5270 }
 0x160   :  { %v4689_v23 = vrot.slane %v4649_v10, %v7298_v56  ;;  %v5696_v8 = vrot.slane %v5271_v17, %v7298_v56  ;;  %v5966_v17 = vld [vmem:[#allocation9 + $0x1e0] sm:$0xff] }
 0x162   :  { %v4703_v55 = vsel %vm4702_vm13, %v4689_v23, %v4701_v42  ;;  %v5902_v23 = vld [vmem:[#allocation7 + $0x1e0] sm:$0xff]  ;;  %v4708_v42 = vld [vmem:[#allocation3] sm:$0xff] }
 0x163   :  { %v4705_v7 = vadd.f32 %v4703_v55, %v3199_v29  ;;  %v5901_v55 = vld [vmem:[#allocation7 + $0x1d8] sm:$0xff] }
 0x165   :  { %4707 = vst.msk [vmem:[#allocation2] sm:$0xff] %vm78_vm6, %v4705_v7  ;;  %v5900_v7 = vld [vmem:[#allocation7 + $0x1d0] sm:$0xff] }
 0x167   :  { %v5109_v46 = vpop.xlane.xlu0 %5108 }
 0x168   :  { %v5688_v21 = vrot.slane %v5109_v46, %v7298_v56  ;;  %v5889_v46 = vld [vmem:[#allocation7 + $0x178] sm:$0xff] }
 0x16a   :  { %v5717_v44 = vsel %vm4690_vm7, %v5692_v45, %v5688_v21  ;;  %v5887_v21 = vld [vmem:[#allocation7 + $0x168] sm:$0xff]  ;;  %v5962_v45 = vld [vmem:[#allocation9 + $0x1c0] sm:$0xff] }
 0x16b   :  { %v5718_v24 = vsel %vm4692_vm8, %v5696_v8, %v5717_v44  ;;  %v5960_v44 = vld [vmem:[#allocation9 + $0x1b0] sm:$0xff]  ;;  %v5882_v8 = vld [vmem:[#allocation7 + $0x140] sm:$0xff] }
 0x16c   :  { %v5730_v57 = vld [vmem:[#allocation2] sm:$0xff] }
 0x16d   :  { %v5731_v18 = vmul.f32 0.0004, %v5730_v57 }
 0x16f   :  { %6253 = vmatmul.mubr.msk.f32.vlgmr.msra.gmra.mxu0 %vm78_vm6, %v5731_v18  ;;  %v5352_v51 = vpop.xlane.xlu1 %5351  ;;  %v5899_v18 = vld [vmem:[#allocation7 + $0x1c8] sm:$0xff] }
 0x170   :  { %5831 = vmatprep.mubr.f32.mxu0 %v6546_v62  ;;  %6042 = vmatpush1.msra.mxu0 %v5872_v34  ;;  %v5860_v62 = vld [vmem:[#allocation7 + $0x90] sm:$0xff]  ;;  %v5700_v11 = vrot.slane %v5352_v51, %v7298_v56  ;;  %v5961_v51 = vld [vmem:[#allocation9 + $0x1b8] sm:$0xff] }
 0x171   :  { %6043 = vmatprep.subr.mxu0 %v5871_v49  ;;  %v5898_v49 = vld [vmem:[#allocation7 + $0x1c0] sm:$0xff] }
 0x172   :  { %6044 = vmatpush1.msra.mxu0 %v5870_v22  ;;  %v5719_v36 = vsel %vm4694_vm9, %v5700_v11, %v5718_v24  ;;  %v5897_v22 = vld [vmem:[#allocation7 + $0x1b8] sm:$0xff]  ;;  %v5880_v24 = vld [vmem:[#allocation7 + $0x130] sm:$0xff] }
 0x173   :  { %6045 = vmatprep.subr.mxu0 %v5869_v43  ;;  %v5896_v43 = vld [vmem:[#allocation7 + $0x1b0] sm:$0xff]  ;;  %v5881_v11 = vld [vmem:[#allocation7 + $0x138] sm:$0xff] }
 0x174   :  { %6046 = vmatpush1.msra.mxu0 %v5868_v13  ;;  %v5894_v13 = vld [vmem:[#allocation7 + $0x1a0] sm:$0xff] }
 0x175   :  { %6047 = vmatprep.subr.mxu0 %v5867_v16 }
 0x176   :  { %6048 = vmatpush1.msra.mxu0 %v5866_v35 }
 0x177   :  { %6049 = vmatprep.subr.mxu0 %v5865_v4  ;;  %v5906_v4 = vld [vmem:[#allocation9] sm:$0xff] }
 0x178   :  { %6050 = vmatpush1.msra.mxu0 %v5864_v60  ;;  %v5433_v52 = vpop.xlane.xlu0 %5432  ;;  %v5969_v60 = vld [vmem:[#allocation9 + $0x1f8] sm:$0xff]  ;;  %6001 = vmatpush1.msra.mxu1 %v5906_v4 }
 0x179   :  { %6051 = vmatprep.subr.mxu0 %v5863_v59  ;;  %v5704_v19 = vrot.slane %v5433_v52, %v7298_v56  ;;  %v5892_v59 = vld [vmem:[#allocation7 + $0x190] sm:$0xff]  ;;  %6002 = vmatprep.subr.mxu1 %v5969_v60  ;;  %v5883_v52 = vld [vmem:[#allocation7 + $0x148] sm:$0xff] }
 0x17a   :  { %6052 = vmatpush1.msra.mxu0 %v5862_v5  ;;  %v5968_v5 = vld [vmem:[#allocation9 + $0x1f0] sm:$0xff] }
 0x17b   :  { %6053 = vmatprep.subr.mxu0 %v5861_v6  ;;  %v5720_v2 = vsel %vm4696_vm10, %v5704_v19, %v5719_v36  ;;  %v5891_v6 = vld [vmem:[#allocation7 + $0x188] sm:$0xff]  ;;  %6003 = vmatpush2.msra.mxu1 %v5968_v5  ;;  %v5877_v36 = vld [vmem:[#allocation7 + $0x118] sm:$0xff] }
 0x17c   :  { %6054 = vmatpush1.msra.mxu0 %v5860_v62  ;;  %v5967_v62 = vld [vmem:[#allocation9 + $0x1e8] sm:$0xff] }
 0x17d   :  { %6055 = vmatprep.subr.mxu0 %v5859_v30  ;;  %v5890_v30 = vld [vmem:[#allocation7 + $0x180] sm:$0xff]  ;;  %6004 = vmatprep.subr.mxu1 %v5967_v62  ;;  %v5955_v19 = vld [vmem:[#allocation9 + $0x188] sm:$0xff] }
 0x17e   :  { %6056 = vmatpush1.msra.mxu0 %v5858_v3  ;;  %v5965_v3 = vld [vmem:[#allocation9 + $0x1d8] sm:$0xff]  ;;  %6005 = vmatpush2.msra.mxu1 %v5966_v17 }
 0x17f   :  { %6057 = vmatprep.subr.mxu0 %v5857_v14  ;;  %v5888_v14 = vld [vmem:[#allocation7 + $0x170] sm:$0xff]  ;;  %6006 = vmatprep.subr.mxu1 %v5965_v3  ;;  %v6142_v3 = vld [vmem:[%s7456_s6 + $0x70] sm:$0xff] }
 0x180   :  { %6058 = vmatpush1.msra.mxu0 %v5856_v58  ;;  %v5514_v32 = vpop.xlane.xlu1 %5513  ;;  %v5964_v58 = vld [vmem:[#allocation9 + $0x1d0] sm:$0xff] }
 0x181   :  { %6059 = vmatprep.subr.mxu0 %v5855_v9  ;;  %v5708_v1 = vrot.slane %v5514_v32, %v7298_v56  ;;  %v5963_v9 = vld [vmem:[#allocation9 + $0x1c8] sm:$0xff]  ;;  %6007 = vmatpush2.msra.mxu1 %v5964_v58  ;;  %v5878_v32 = vld [vmem:[#allocation7 + $0x120] sm:$0xff]  ;;  %v6141_v58 = vld [vmem:[%s7456_s6 + $0x68] sm:$0xff] }
 0x182   :  { %6060 = vmatpush1.msra.mxu0 %v5854_v28  ;;  %v5886_v28 = vld [vmem:[#allocation7 + $0x160] sm:$0xff]  ;;  %6008 = vmatprep.subr.mxu1 %v5963_v9  ;;  %v6140_v9 = vld [vmem:[%s7456_s6 + $0x60] sm:$0xff] }
 0x183   :  { %6061 = vmatprep.subr.mxu0 %v5853_v26  ;;  %v5721_v15 = vsel %vm4698_vm11, %v5708_v1, %v5720_v2  ;;  %v5885_v26 = vld [vmem:[#allocation7 + $0x158] sm:$0xff]  ;;  %6009 = vmatpush2.msra.mxu1 %v5962_v45  ;;  %v5875_v1 = vld [vmem:[#allocation7 + $0x108] sm:$0xff]  ;;  %v5874_v2 = vld [vmem:[#allocation7 + $0x100] sm:$0xff] }
 0x184   :  { %6062 = vmatpush1.msra.mxu0 %v5852_v41  ;;  %v5884_v41 = vld [vmem:[#allocation7 + $0x150] sm:$0xff]  ;;  %6010 = vmatprep.subr.mxu1 %v5961_v51  ;;  %v6139_v45 = vld [vmem:[%s7456_s6 + $0x58] sm:$0xff]  ;;  %v6138_v51 = vld [vmem:[%s7456_s6 + $0x50] sm:$0xff] }
 0x185   :  { %6063 = vmatprep.subr.mxu0 %v5851_v54  ;;  %v5959_v54 = vld [vmem:[#allocation9 + $0x1a8] sm:$0xff]  ;;  %6011 = vmatpush2.msra.mxu1 %v5960_v44  ;;  %v6137_v44 = vld [vmem:[%s7456_s6 + $0x48] sm:$0xff] }
 0x186   :  { %6064 = vmatpush1.msra.mxu0 %v5850_v48  ;;  %v5958_v48 = vld [vmem:[#allocation9 + $0x1a0] sm:$0xff]  ;;  %6012 = vmatprep.subr.mxu1 %v5959_v54  ;;  %v6136_v54 = vld [vmem:[%s7456_s6 + $0x40] sm:$0xff] }
 0x187   :  { %6065 = vmatprep.subr.mxu0 %v5849_v27  ;;  %v5595_v20 = vpop.xlane.xlu0 %5594  ;;  %6013 = vmatpush2.msra.mxu1 %v5958_v48  ;;  %v5957_v27 = vld [vmem:[#allocation9 + $0x198] sm:$0xff]  ;;  %v6135_v48 = vld [vmem:[%s7456_s6 + $0x38] sm:$0xff] }
 0x188   :  { %6066 = vmatpush1.msra.mxu0 %v5848_v53  ;;  %v5712_v0 = vrot.slane %v5595_v20, %v7298_v56  ;;  %6014 = vmatprep.subr.mxu1 %v5957_v27  ;;  %v5956_v53 = vld [vmem:[#allocation9 + $0x190] sm:$0xff]  ;;  %v5953_v20 = vld [vmem:[#allocation9 + $0x178] sm:$0xff] }
 0x189   :  { %6067 = vmatprep.subr.mxu0 %v5847_v40  ;;  %v5879_v40 = vld [vmem:[#allocation7 + $0x128] sm:$0xff]  ;;  %6015 = vmatpush2.msra.mxu1 %v5956_v53  ;;  %v6134_v27 = vld [vmem:[%s7456_s6 + $0x30] sm:$0xff]  ;;  %v6133_v53 = vld [vmem:[%s7456_s6 + $0x28] sm:$0xff] }
 0x18a   :  { %6068 = vmatpush1.msra.mxu0 %v5846_v39  ;;  %v5722_v10 = vsel %vm4700_vm12, %v5712_v0, %v5721_v15  ;;  %6016 = vmatprep.subr.mxu1 %v5955_v19  ;;  %v5954_v39 = vld [vmem:[#allocation9 + $0x180] sm:$0xff]  ;;  %v6132_v19 = vld [vmem:[%s7456_s6 + $0x20] sm:$0xff] }
 0x18b   :  { %6069 = vmatprep.subr.mxu0 %v5845_v33  ;;  %6017 = vmatpush2.msra.mxu1 %v5954_v39  ;;  %v5876_v33 = vld [vmem:[#allocation7 + $0x110] sm:$0xff]  ;;  %v5950_v0 = vld [vmem:[#allocation9 + $0x160] sm:$0xff] }
 0x18c   :  { %6070 = vmatpush1.msra.mxu0 %v5844_v63  ;;  %6018 = vmatprep.subr.mxu1 %v5953_v20  ;;  %v5952_v63 = vld [vmem:[#allocation9 + $0x170] sm:$0xff]  ;;  %v5946_v15 = vld [vmem:[#allocation9 + $0x140] sm:$0xff] }
 0x18d   :  { %6071 = vmatprep.subr.mxu0 %v5843_v47  ;;  %6019 = vmatpush2.msra.mxu1 %v5952_v63  ;;  %v5951_v47 = vld [vmem:[#allocation9 + $0x168] sm:$0xff]  ;;  %v6130_v20 = vld [vmem:[%s7456_s6 + $0x10] sm:$0xff]  ;;  %v6129_v63 = vld [vmem:[%s7456_s6 + $0x8] sm:$0xff] }
 0x18e   :  { %6072 = vmatpush1.msra.mxu0 %v5842_v25  ;;  %v5676_v50 = vpop.xlane.xlu1 %5675  ;;  %6020 = vmatprep.subr.mxu1 %v5951_v47  ;;  %v5949_v25 = vld [vmem:[#allocation9 + $0x158] sm:$0xff]  ;;  %v6131_v39 = vld [vmem:[%s7456_s6 + $0x18] sm:$0xff]  ;;  %v6128_v47 = vld [vmem:[%s7456_s6] sm:$0xff] }
 0x18f   :  { %6073 = vmatprep.subr.mxu0 %v5905_v31  ;;  %v5716_v29 = vrot.slane %v5676_v50, %v7298_v56  ;;  %v5895_v56 = vld [vmem:[#allocation7 + $0x1a8] sm:$0xff]  ;;  %v5948_v31 = vld [vmem:[#allocation9 + $0x150] sm:$0xff]  ;;  %6021 = vmatpush2.msra.mxu1 %v5950_v0 }
 0x190   :  { %6074 = vmatpush2.msra.mxu0 %v5904_v12  ;;  %v5947_v12 = vld [vmem:[#allocation9 + $0x148] sm:$0xff]  ;;  %6022 = vmatprep.subr.mxu1 %v5949_v25 }
 0x191   :  { %6075 = vmatprep.subr.mxu0 %v5903_v37  ;;  %v5723_v57 = vsel %vm4702_vm13, %v5716_v29, %v5722_v10  ;;  %6023 = vmatpush2.msra.mxu1 %v5948_v31  ;;  %v5945_v37 = vld [vmem:[#allocation9 + $0x138] sm:$0xff]  ;;  %v5944_v10 = vld [vmem:[#allocation9 + $0x130] sm:$0xff]  ;;  %v5943_v50 = vld [vmem:[#allocation9 + $0x128] sm:$0xff] }
 0x192   :  { %6076 = vmatpush2.msra.mxu0 %v5902_v23  ;;  %v5725_v34 = vadd.f32 %v5723_v57, %v4708_v42  ;;  %6024 = vmatprep.subr.mxu1 %v5947_v12  ;;  %v5942_v23 = vld [vmem:[#allocation9 + $0x120] sm:$0xff]  ;;  %v5941_v29 = vld [vmem:[#allocation9 + $0x118] sm:$0xff]  ;;  %v5940_v42 = vld [vmem:[#allocation9 + $0x110] sm:$0xff] }
 0x193   :  { %6077 = vmatprep.subr.mxu0 %v5901_v55  ;;  %6025 = vmatpush2.msra.mxu1 %v5946_v15  ;;  %v5939_v55 = vld [vmem:[#allocation9 + $0x108] sm:$0xff] }
 0x194   :  { %6078 = vmatpush2.msra.mxu0 %v5900_v7  ;;  %5726 = vst.msk [vmem:[#allocation3] sm:$0xff] %vm78_vm6, %v5725_v34  ;;  %6026 = vmatprep.subr.mxu1 %v5945_v37  ;;  %v5938_v7 = vld [vmem:[#allocation9 + $0x100] sm:$0xff]  ;;  %v5735_v34 = vld [vmem:[%s7452_s2] sm:$0x3] }
 0x195   :  { %6079 = vmatprep.subr.mxu0 %v5899_v18  ;;  %6027 = vmatpush2.msra.mxu1 %v5944_v10  ;;  %v6159_v57 = vld [vmem:[%s7456_s6 + $0xf8] sm:$0xff]  ;;  %v5739_v18 = vsub.s32 0, %v7294_v61 }
 0x196   :  { %6080 = vmatpush2.msra.mxu0 %v5898_v49  ;;  %6028 = vmatprep.subr.mxu1 %v5943_v50  ;;  %v5743_v49 = vsub.s32 1, %v7294_v61 }
 0x197   :  { %6081 = vmatprep.subr.mxu0 %v5897_v22  ;;  %6029 = vmatpush2.msra.mxu1 %v5942_v23  ;;  %v5740_v22 = vrot.slane %v5735_v34, %v5739_v18 }
 0x198   :  { %6082 = vmatpush2.msra.mxu0 %v5896_v43  ;;  %6030 = vmatprep.subr.mxu1 %v5941_v29  ;;  %v5744_v43 = vrot.slane %v5735_v34, %v5743_v49 }
 0x199   :  { %6083 = vmatprep.subr.mxu0 %v5895_v56  ;;  %6031 = vmatpush2.msra.mxu1 %v5940_v42 }
 0x19a   :  { %6084 = vmatpush2.msra.mxu0 %v5894_v13  ;;  %6032 = vmatprep.subr.mxu1 %v5939_v55 }
 0x19b   :  { %v5732_v16 = vld [vmem:[#allocation3] sm:$0xff]  ;;  %6085 = vmatprep.subr.mxu0 %v5893_v38  ;;  %6033 = vmatpush2.msra.mxu1 %v5938_v7 }
 0x19c   :  { %v5733_v35 = vmul.f32 0.0004, %v5732_v16  ;;  %6086 = vmatpush2.msra.mxu0 %v5892_v59  ;;  %6257 = vmatprep.subr.mxu1 %v6159_v57  ;;  %v6255_v57 = vld [vmem:[#allocation4] ss:$0 sm:$0xff] }
 0x19d   :  { %6087 = vmatprep.subr.mxu0 %v5891_v6 }
 0x19e   :  { %6254 = vmatmul.mubr.msk.f32.gmra.mxu0 %vm78_vm6, %v5733_v35 }
 0x19f   :  { %6088 = vmatpush2.msra.mxu0 %v5890_v30  ;;  %v6143_v30 = vld [vmem:[%s7456_s6 + $0x78] sm:$0xff] }
 0x1a0   :  { %6089 = vmatprep.subr.mxu0 %v5889_v46  ;;  %v6158_v46 = vld [vmem:[%s7456_s6 + $0xf0] sm:$0xff] }
 0x1a1   :  { %6090 = vmatpush2.msra.mxu0 %v5888_v14  ;;  %v6157_v14 = vld [vmem:[%s7456_s6 + $0xe8] sm:$0xff] }
 0x1a2   :  { %6091 = vmatprep.subr.mxu0 %v5887_v21  ;;  %v6156_v21 = vld [vmem:[%s7456_s6 + $0xe0] sm:$0xff] }
 0x1a3   :  { %6092 = vmatpush2.msra.mxu0 %v5886_v28  ;;  %v6155_v28 = vld [vmem:[%s7456_s6 + $0xd8] sm:$0xff] }
 0x1a4   :  { %6093 = vmatprep.subr.mxu0 %v5885_v26  ;;  %v6154_v26 = vld [vmem:[%s7456_s6 + $0xd0] sm:$0xff] }
 0x1a5   :  { %6094 = vmatpush2.msra.mxu0 %v5884_v41  ;;  %v6153_v41 = vld [vmem:[%s7456_s6 + $0xc8] sm:$0xff] }
 0x1a6   :  { %6095 = vmatprep.subr.mxu0 %v5883_v52  ;;  %v6152_v52 = vld [vmem:[%s7456_s6 + $0xc0] sm:$0xff] }
 0x1a7   :  { %6096 = vmatpush2.msra.mxu0 %v5882_v8  ;;  %v6151_v8 = vld [vmem:[%s7456_s6 + $0xb8] sm:$0xff] }
 0x1a8   :  { %6097 = vmatprep.subr.mxu0 %v5881_v11  ;;  %v6150_v11 = vld [vmem:[%s7456_s6 + $0xb0] sm:$0xff] }
 0x1a9   :  { %6098 = vmatpush2.msra.mxu0 %v5880_v24  ;;  %v6149_v24 = vld [vmem:[%s7456_s6 + $0xa8] sm:$0xff] }
 0x1aa   :  { %6099 = vmatprep.subr.mxu0 %v5879_v40  ;;  %v6148_v40 = vld [vmem:[%s7456_s6 + $0xa0] sm:$0xff] }
 0x1ab   :  { %6100 = vmatpush2.msra.mxu0 %v5878_v32  ;;  %v6147_v32 = vld [vmem:[%s7456_s6 + $0x98] sm:$0xff] }
 0x1ac   :  { %6101 = vmatprep.subr.mxu0 %v5877_v36  ;;  %v6146_v36 = vld [vmem:[%s7456_s6 + $0x90] sm:$0xff] }
 0x1ad   :  { %6102 = vmatpush2.msra.mxu0 %v5876_v33  ;;  %v6145_v33 = vld [vmem:[%s7456_s6 + $0x88] sm:$0xff] }
 0x1ae   :  { %6103 = vmatprep.subr.mxu0 %v5875_v1  ;;  %v6144_v1 = vld [vmem:[%s7456_s6 + $0x80] sm:$0xff] }
 0x1af   :  { %6104 = vmatpush2.msra.mxu0 %v5874_v2  ;;  %v6112_v2 = vld [vmem:[%s7455_s5] sm:$0x3] }
 0x1b0   :  { %v6117_v31 = vrot.slane %v6112_v2, %v5739_v18  ;;  %v6121_v15 = vrot.slane %v6112_v2, %v5743_v49 }
 0x22f   :  { %v5827_v56 = vpop.f32.mrf.mxu0 }
 0x230   :  { %v5828_v13 = vadd.f32 %v5827_v56, %v5740_v22 }
 0x231   :  { %v5829_v16 = vpop.f32.mrf.mxu0 }
 0x232   :  { %v5830_v35 = vadd.f32 %v5829_v16, %v5744_v43 }
 0x234   :  { %6462 = vtanh.f32 %v5830_v35 }
 0x235   :  { %6464 = vtanh.f32 %v5828_v13 }
 0x241   :  { %v6463_v4 = vpop.eup %6462 }
 0x242   :  { %v6465_v38 = vpop.eup %6464  ;;  %6105 = vmatprep.mubr.f32.mxu0 %v6463_v4 }
 0x243   :  { %6106 = vmatmul.mubr.f32.vlgmr.msra.gmra.mxu0 %v6465_v38 }
 0x25e   :  { %v5833_v60 = vpop.f32.mrf.mxu0 }
 0x25f   :  { %v5834_v59 = vadd.f32 %v5833_v60, %v5740_v22 }
 0x260   :  { %v5835_v5 = vpop.f32.mrf.mxu0 }
 0x261   :  { %v5836_v6 = vadd.f32 %v5835_v5, %v5744_v43 }
 0x263   :  { %6466 = vtanh.f32 %v5836_v6 }
 0x264   :  { %6468 = vtanh.f32 %v5834_v59 }
 0x270   :  { %v6467_v62 = vpop.eup %6466 }
 0x271   :  { %v6469_v17 = vpop.eup %6468  ;;  %6034 = vmatprep.mubr.f32.mxu1 %v6467_v62 }
 0x272   :  { %6035 = vmatmul.mubr.f32.vlgmr.msra.gmra.mxu1 %v6469_v17 }
 0x273   :  { %6258 = vmatpush3.msra.mxu1 %v6143_v30 }
 0x274   :  { %6259 = vmatprep.subr.mxu1 %v6158_v46 }
 0x275   :  { %6260 = vmatpush3.msra.mxu1 %v6142_v3 }
 0x276   :  { %6261 = vmatprep.subr.mxu1 %v6157_v14 }
 0x277   :  { %6262 = vmatpush3.msra.mxu1 %v6141_v58 }
 0x278   :  { %6263 = vmatprep.subr.mxu1 %v6156_v21 }
 0x279   :  { %6264 = vmatpush3.msra.mxu1 %v6140_v9 }
 0x27a   :  { %6265 = vmatprep.subr.mxu1 %v6155_v28 }
 0x27b   :  { %6266 = vmatpush3.msra.mxu1 %v6139_v45 }
 0x27c   :  { %6267 = vmatprep.subr.mxu1 %v6154_v26 }
 0x27d   :  { %6268 = vmatpush3.msra.mxu1 %v6138_v51 }
 0x27e   :  { %6269 = vmatprep.subr.mxu1 %v6153_v41 }
 0x27f   :  { %6270 = vmatpush3.msra.mxu1 %v6137_v44 }
 0x280   :  { %6271 = vmatprep.subr.mxu1 %v6152_v52 }
 0x281   :  { %6272 = vmatpush3.msra.mxu1 %v6136_v54 }
 0x282   :  { %6273 = vmatprep.subr.mxu1 %v6151_v8 }
 0x283   :  { %6274 = vmatpush3.msra.mxu1 %v6135_v48 }
 0x284   :  { %6275 = vmatprep.subr.mxu1 %v6150_v11 }
 0x285   :  { %6276 = vmatpush3.msra.mxu1 %v6134_v27 }
 0x286   :  { %6277 = vmatprep.subr.mxu1 %v6149_v24 }
 0x287   :  { %6278 = vmatpush3.msra.mxu1 %v6133_v53 }
 0x288   :  { %6279 = vmatprep.subr.mxu1 %v6148_v40 }
 0x289   :  { %6280 = vmatpush3.msra.mxu1 %v6132_v19 }
 0x28a   :  { %6281 = vmatprep.subr.mxu1 %v6147_v32 }
 0x28b   :  { %6282 = vmatpush3.msra.mxu1 %v6131_v39 }
 0x28c   :  { %6283 = vmatprep.subr.mxu1 %v6146_v36 }
 0x28d   :  { %6284 = vmatpush3.msra.mxu1 %v6130_v20 }
 0x28e   :  { %6285 = vmatprep.subr.mxu1 %v6145_v33 }
 0x28f   :  { %6286 = vmatpush3.msra.mxu1 %v6129_v63 }
 0x290   :  { %6287 = vmatprep.subr.mxu1 %v6144_v1 }
 0x291   :  { %6288 = vmatpush3.msra.mxu1 %v6128_v47 }
 0x303   :  { %v6107_v0 = vpop.f32.mrf.mxu0 }
 0x305   :  { %v6109_v37 = vpop.f32.mrf.mxu0 }
 0x332   :  { %v6036_v25 = vpop.f32.mrf.mxu1 }
 0x333   :  { %v6108_v12 = vadd.f32 %v6107_v0, %v6036_v25 }
 0x334   :  { %v6038_v10 = vpop.f32.mrf.mxu1 }
 0x335   :  { %v6110_v50 = vadd.f32 %v6109_v37, %v6038_v10  ;;  %v6124_v23 = vadd.f32 %v6117_v31, %v6108_v12 }
 0x337   :  { %v6125_v29 = vadd.f32 %v6121_v15, %v6110_v50  ;;  %v6126_v55 = vmax.f32 %v6124_v23, 0.0 }
 0x339   :  { %v6127_v42 = vmax.f32 %v6125_v29, 0.0 }
 0x33b   :  { %6231 = vmatprep.mubr.f32.mxu1 %v6127_v42 }
 0x33c   :  { %6232 = vmatmul.mubr.f32.vlgmr.msra.gmra.mxu1 %v6126_v55 }
 0x3fc   :  { %v6289_v7 = vpop.f32.mrf.mxu1 }
 0x3fe   :  { %v6290_v34 = vpop.f32.mrf.mxu1 }
 0x3ff   :  { %v6291_v22 = vadd.f32 %v6290_v34, %v6289_v7 }
 0x401   :  { %v6234_v43 = vadd.f32 %v6291_v22, %v6255_v57 }
 0x403   :  { %v6256_v56 = vmul.f32 -1.442695, %v6234_v43 }
 0x405   :  { %6470 = vpow2.f32 %v6256_v56 }
 0x412   :  { %v6471_v18 = vpop.eup %6470 }
 0x413   :  { %v6240_v13 = vadd.f32 1.0, %v6471_v18 }
 0x415   :  { %6472 = vrcp.f32 %v6240_v13 }
 0x422   :  { %v6473_v61 = vpop.eup %6472 }
 0x423   :  { %6244 = vst.msk [vmem:[%s7458_s8] sm:$0xff] %vm6243_vm14, %v6473_v61 }
 0x424   :  { %6249 = vsyncpa [#allocation6], 1 }
 0x425   :  { %6250 = vsyncpa [#allocation8], 1 }

</bundles_post_ra>
